<compile_context>
chip_gen: v6e
topology: v6e:2x2x1
jax: 0.10.0
libtpu: 0.0.40
codegen_flags: <defaults>
</compile_context>

<pallas_src>
import functools

import jax
import jax.numpy as jnp
from jax.experimental import pallas as pl
from jax.experimental.pallas import tpu as pltpu

# ---- config (mirrors config['decoder'] of the PyTorch module) ----
INPUT_CH = 3          # embed channels
INPUT_CH_POS = 12     # positional embedding channels
GEO_FEAT_DIM = 15
HIDDEN_DIM = 32       # SDFNet hidden
HIDDEN_DIM_COLOR = 32 # ColorNet hidden

IN_FUSED = 16         # 3 + 12, zero-padded to 16 lanes
OUT_CH = 4            # rgb(3) + sdf(1)

TN_MAX = 8192         # max rows per grid step (fits all gens' scoped VMEM comfortably)
TN_MIN = 256          # keep tiles sublane-aligned and not too tiny


def _make_kernel(compute_dtype):
    """Kernel body. Weights arrive already cast; activations cast before each dot."""
    cd = compute_dtype

    def kernel(x_ref, w0_ref, wp_ref, wf_ref, ws_ref, wc1_ref, wc2_ref, out_ref):
        x = x_ref[...]                                        # [TN, 16], already compute dtype
        # SDF hidden layer (padded input rows are zero -> harmless)
        h1 = jnp.maximum(
            jnp.dot(x, w0_ref[...], preferred_element_type=jnp.float32), 0.0)  # [TN, hd] f32
        h1c = h1.astype(cd)
        # Color-net input: pos @ Wc0_pos + geo @ Wc0_geo, with geo folded into h1 @ w_fused
        c = jnp.maximum(
            jnp.dot(x, wp_ref[...], preferred_element_type=jnp.float32)
            + jnp.dot(h1c, wf_ref[...], preferred_element_type=jnp.float32), 0.0)
        c2 = jnp.maximum(
            jnp.dot(c.astype(cd), wc1_ref[...], preferred_element_type=jnp.float32), 0.0)
        # out[:, :3] = rgb, out[:, 3] = sdf -- produced by padded weights, no lane concat
        out = (jnp.dot(c2.astype(cd), wc2_ref[...], preferred_element_type=jnp.float32)
               + jnp.dot(h1c, ws_ref[...], preferred_element_type=jnp.float32))
        out_ref[...] = out.astype(out_ref.dtype)

    return kernel


def _choose_tile(n):
    """Row tile: big to amortize per-step overhead, >=2 grid steps when possible (v7x)."""
    if n >= 2 * TN_MAX:
        return TN_MAX
    half = (n + 1) // 2
    tn = ((half + TN_MIN - 1) // TN_MIN) * TN_MIN
    return max(TN_MIN, min(tn, TN_MAX))


@functools.partial(jax.jit, static_argnames=("use_bf16_matmul",))
def color_sdf_net_v2(embed, embed_pos, params, *, use_bf16_matmul=False):
    """embed: [N, 3] f32, embed_pos: [N, 12] f32 -> [N, 4] f32 (rgb, sdf)."""
    # TODO(synk): the PyTorch module also supports embed_pos=None; only the embed_pos path
    # (the one exercised by ColorSDFNet_v2's callers) is implemented here.
    N = embed.shape[0]
    w_sdf0, w_sdf1, w_c0, w_c1, w_c2 = params
    hd = w_sdf0.shape[1]
    hc = w_c0.shape[1]

    compute_dtype = jnp.bfloat16 if use_bf16_matmul else jnp.float32

    # ---- one-time weight prep (wrapper-side, cheap, keeps the kernel slice-free) ----
    # first SDF layer, input zero-padded 15 -> 16
    w_sdf0p = jnp.zeros((IN_FUSED, hd), jnp.float32).at[:INPUT_CH + INPUT_CH_POS].set(w_sdf0)
    # pos -> color-net-input path, lifted onto the fused [.,16] input (embed rows zeroed)
    w_pos16 = jnp.zeros((IN_FUSED, hc), jnp.float32).at[INPUT_CH:INPUT_CH + INPUT_CH_POS].set(
        w_c0[:INPUT_CH_POS])
    # geo path folded: geo @ Wc0_geo == h1 @ (w_sdf1[:,1:] @ Wc0_geo)
    w_fused = w_sdf1[:, 1:] @ w_c0[INPUT_CH_POS:]                       # [hd, hc]
    # sdf lands in output column 3
    w_sdfcol4 = jnp.zeros((hd, OUT_CH), jnp.float32).at[:, 3].set(w_sdf1[:, 0])
    # rgb lands in output columns 0..2
    w_c2p4 = jnp.zeros((hc, OUT_CH), jnp.float32).at[:, :3].set(w_c2)

    weights = [w_sdf0p, w_pos16, w_fused, w_sdfcol4, w_c1, w_c2p4]
    weights = [w.astype(compute_dtype) for w in weights]

    # ---- fuse + pad activations: [N, 3] + [N, 12] -> [Np, 16] ----
    x16 = jnp.concatenate(
        [embed, embed_pos, jnp.zeros((N, IN_FUSED - INPUT_CH - INPUT_CH_POS), embed.dtype)],
        axis=-1).astype(compute_dtype)

    tn = _choose_tile(N)
    grid_n = pl.cdiv(N, tn)
    n_pad = grid_n * tn
    if n_pad != N:
        x16 = jnp.pad(x16, ((0, n_pad - N), (0, 0)))

    row_in_spec = pl.BlockSpec((tn, IN_FUSED), lambda i: (i, 0))
    row_out_spec = pl.BlockSpec((tn, OUT_CH), lambda i: (i, 0))
    full_spec = lambda w: pl.BlockSpec(w.shape, lambda i: (0, 0))

    out = pl.pallas_call(
        _make_kernel(compute_dtype),
        out_shape=jax.ShapeDtypeStruct((n_pad, OUT_CH), jnp.float32),
        grid_spec=pltpu.PrefetchScalarGridSpec(
            num_scalar_prefetch=0,
            grid=(grid_n,),
            in_specs=[row_in_spec] + [full_spec(w) for w in weights],
            out_specs=row_out_spec,
        ),
        compiler_params=pltpu.CompilerParams(
            dimension_semantics=("parallel",),
            # double-buffered [TN,16] input + [TN,4] output + three [TN,32] f32
            # intermediates + tiny weights; <= ~10 MiB at TN=8192, well under all
            # scoped limits (v5e default is 16 MiB, so raise it explicitly).
            vmem_limit_bytes=32 * 1024 * 1024),
    )(x16, *weights)

    return out[:N] if n_pad != N else out


def init_params(key):
    """Deterministic bias-free Linear weights, stored as [in_dim, out_dim]."""
    ks = jax.random.split(key, 5)

    def lin(k, in_dim, out_dim):
        bound = 1.0 / jnp.sqrt(in_dim)
        return jax.random.uniform(k, (in_dim, out_dim), jnp.float32, -bound, bound)

    w_sdf0 = lin(ks[0], INPUT_CH + INPUT_CH_POS, HIDDEN_DIM)
    w_sdf1 = lin(ks[1], HIDDEN_DIM, 1 + GEO_FEAT_DIM)
    w_c0 = lin(ks[2], INPUT_CH_POS + GEO_FEAT_DIM, HIDDEN_DIM_COLOR)
    w_c1 = lin(ks[3], HIDDEN_DIM_COLOR, HIDDEN_DIM_COLOR)
    w_c2 = lin(ks[4], HIDDEN_DIM_COLOR, 3)
    return (w_sdf0, w_sdf1, w_c0, w_c1, w_c2)


def reference(embed, embed_pos, params):
    """Straight JAX transcription of the PyTorch forward (no fusion tricks)."""
    w_sdf0, w_sdf1, w_c0, w_c1, w_c2 = params
    x = jnp.concatenate([embed, embed_pos], axis=-1)
    h = jnp.maximum(x @ w_sdf0, 0.0) @ w_sdf1
    sdf, geo = h[..., :1], h[..., 1:]
    c = jnp.concatenate([embed_pos, geo], axis=-1)
    c = jnp.maximum(c @ w_c0, 0.0)
    c = jnp.maximum(c @ w_c1, 0.0)
    rgb = c @ w_c2
    return jnp.concatenate([rgb, sdf], axis=-1)


if __name__ == "__main__":
    key = jax.random.PRNGKey(0)
    k_emb, k_pos, k_par = jax.random.split(key, 3)

    N = 1000  # small, deliberately not tile-aligned to exercise the remainder path
    embed = jax.random.normal(k_emb, (N, INPUT_CH), jnp.float32)
    embed_pos = jax.random.normal(k_pos, (N, INPUT_CH_POS), jnp.float32)
    params = init_params(k_par)

    out = color_sdf_net_v2(embed, embed_pos, params)  # fp32 matmuls by default
    out = jax.block_until_ready(out)

    ref = reference(embed, embed_pos, params)
    assert out.shape == (N, OUT_CH)
    # fp32 everywhere; only difference vs reference is fp32 reassociation from the
    # geo-path weight folding, so a tight tolerance is appropriate.
    assert jnp.allclose(out, ref, atol=1e-4, rtol=1e-4), "mismatch vs JAX reference"

    print("KERNEL_OK")
</pallas_src>

<mosaic_0001>
module attributes {stable_mosaic.version = 11 : i64} {
  func.func @kernel(%arg0: i32, %arg1: memref<512x16xf32, #tpu.memory_space<vmem>>, %arg2: memref<16x32xf32, #tpu.memory_space<vmem>>, %arg3: memref<16x32xf32, #tpu.memory_space<vmem>>, %arg4: memref<32x32xf32, #tpu.memory_space<vmem>>, %arg5: memref<32x4xf32, #tpu.memory_space<vmem>>, %arg6: memref<32x32xf32, #tpu.memory_space<vmem>>, %arg7: memref<32x4xf32, #tpu.memory_space<vmem>>, %arg8: memref<512x4xf32, #tpu.memory_space<vmem>>) attributes {dimension_semantics = [#tpu.dimension_semantics<parallel>], iteration_bounds = array<i64: 2>, scalar_prefetch = 0 : i64, scratch_operands = 0 : i64, tpu.core_type = #tpu.core_type<tc>, window_params = [{transform_indices = @transform_0, window_bounds = array<i64: 512, 16>}, {pipeline_mode = #tpu.pipeline_mode<synchronous>, transform_indices = @transform_1, window_bounds = array<i64: 16, 32>}, {pipeline_mode = #tpu.pipeline_mode<synchronous>, transform_indices = @transform_2, window_bounds = array<i64: 16, 32>}, {pipeline_mode = #tpu.pipeline_mode<synchronous>, transform_indices = @transform_3, window_bounds = array<i64: 32, 32>}, {pipeline_mode = #tpu.pipeline_mode<synchronous>, transform_indices = @transform_4, window_bounds = array<i64: 32, 4>}, {pipeline_mode = #tpu.pipeline_mode<synchronous>, transform_indices = @transform_5, window_bounds = array<i64: 32, 32>}, {pipeline_mode = #tpu.pipeline_mode<synchronous>, transform_indices = @transform_6, window_bounds = array<i64: 32, 4>}, {transform_indices = @transform_7, window_bounds = array<i64: 512, 4>}]} {
    %c0 = arith.constant 0 : index
    %c0_0 = arith.constant 0 : index
    %0 = vector.load %arg1[%c0, %c0_0] : memref<512x16xf32, #tpu.memory_space<vmem>>, vector<512x16xf32>
    %c0_1 = arith.constant 0 : index
    %c0_2 = arith.constant 0 : index
    %1 = vector.load %arg2[%c0_1, %c0_2] : memref<16x32xf32, #tpu.memory_space<vmem>>, vector<16x32xf32>
    %cst = arith.constant dense<0.000000e+00> : vector<512x32xf32>
    %2 = tpu.matmul %0, %1, %cst {dimension_numbers = #tpu.dot_dimension_numbers<[1], [0], [0], [1], [0, 0, 1, 1], [], []>} : vector<512x16xf32>, vector<16x32xf32>, vector<512x32xf32> -> vector<512x32xf32>
    %cst_3 = arith.constant 0.000000e+00 : f32
    %3 = vector.broadcast %cst_3 : f32 to vector<512x32xf32>
    %4 = arith.maximumf %2, %3 : vector<512x32xf32>
    %c0_4 = arith.constant 0 : index
    %c0_5 = arith.constant 0 : index
    %5 = vector.load %arg3[%c0_4, %c0_5] : memref<16x32xf32, #tpu.memory_space<vmem>>, vector<16x32xf32>
    %cst_6 = arith.constant dense<0.000000e+00> : vector<512x32xf32>
    %6 = tpu.matmul %0, %5, %cst_6 {dimension_numbers = #tpu.dot_dimension_numbers<[1], [0], [0], [1], [0, 0, 1, 1], [], []>} : vector<512x16xf32>, vector<16x32xf32>, vector<512x32xf32> -> vector<512x32xf32>
    %c0_7 = arith.constant 0 : index
    %c0_8 = arith.constant 0 : index
    %7 = vector.load %arg4[%c0_7, %c0_8] : memref<32x32xf32, #tpu.memory_space<vmem>>, vector<32x32xf32>
    %cst_9 = arith.constant dense<0.000000e+00> : vector<512x32xf32>
    %8 = tpu.matmul %4, %7, %cst_9 {dimension_numbers = #tpu.dot_dimension_numbers<[1], [0], [0], [1], [0, 0, 1, 1], [], []>} : vector<512x32xf32>, vector<32x32xf32>, vector<512x32xf32> -> vector<512x32xf32>
    %9 = arith.addf %6, %8 : vector<512x32xf32>
    %cst_10 = arith.constant 0.000000e+00 : f32
    %10 = vector.broadcast %cst_10 : f32 to vector<512x32xf32>
    %11 = arith.maximumf %9, %10 : vector<512x32xf32>
    %c0_11 = arith.constant 0 : index
    %c0_12 = arith.constant 0 : index
    %12 = vector.load %arg6[%c0_11, %c0_12] : memref<32x32xf32, #tpu.memory_space<vmem>>, vector<32x32xf32>
    %cst_13 = arith.constant dense<0.000000e+00> : vector<512x32xf32>
    %13 = tpu.matmul %11, %12, %cst_13 {dimension_numbers = #tpu.dot_dimension_numbers<[1], [0], [0], [1], [0, 0, 1, 1], [], []>} : vector<512x32xf32>, vector<32x32xf32>, vector<512x32xf32> -> vector<512x32xf32>
    %cst_14 = arith.constant 0.000000e+00 : f32
    %14 = vector.broadcast %cst_14 : f32 to vector<512x32xf32>
    %15 = arith.maximumf %13, %14 : vector<512x32xf32>
    %c0_15 = arith.constant 0 : index
    %c0_16 = arith.constant 0 : index
    %16 = vector.load %arg7[%c0_15, %c0_16] : memref<32x4xf32, #tpu.memory_space<vmem>>, vector<32x4xf32>
    %cst_17 = arith.constant dense<0.000000e+00> : vector<512x4xf32>
    %17 = tpu.matmul %15, %16, %cst_17 {dimension_numbers = #tpu.dot_dimension_numbers<[1], [0], [0], [1], [0, 0, 1, 1], [], []>} : vector<512x32xf32>, vector<32x4xf32>, vector<512x4xf32> -> vector<512x4xf32>
    %c0_18 = arith.constant 0 : index
    %c0_19 = arith.constant 0 : index
    %18 = vector.load %arg5[%c0_18, %c0_19] : memref<32x4xf32, #tpu.memory_space<vmem>>, vector<32x4xf32>
    %cst_20 = arith.constant dense<0.000000e+00> : vector<512x4xf32>
    %19 = tpu.matmul %4, %18, %cst_20 {dimension_numbers = #tpu.dot_dimension_numbers<[1], [0], [0], [1], [0, 0, 1, 1], [], []>} : vector<512x32xf32>, vector<32x4xf32>, vector<512x4xf32> -> vector<512x4xf32>
    %20 = arith.addf %17, %19 : vector<512x4xf32>
    %c0_21 = arith.constant 0 : index
    %c0_22 = arith.constant 0 : index
    %21 = vector.load %arg8[%c0_21, %c0_22] : memref<512x4xf32, #tpu.memory_space<vmem>>, vector<512x4xf32>
    tpu.vector_store %arg8[%c0_21, %c0_22], %20 {strides = array<i32>} : memref<512x4xf32, #tpu.memory_space<vmem>>, vector<512x4xf32>,
    return
  }
  func.func @transform_0(%arg0: i32) -> (i32, i32) {
    %c0_i32 = arith.constant 0 : i32
    %c0_i32_0 = arith.constant 0 : i32
    return %arg0, %c0_i32 : i32, i32
  }
  func.func @transform_1(%arg0: i32) -> (i32, i32) {
    %c0_i32 = arith.constant 0 : i32
    %c0_i32_0 = arith.constant 0 : i32
    %c0_i32_1 = arith.constant 0 : i32
    return %c0_i32, %c0_i32_0 : i32, i32
  }
  func.func @transform_2(%arg0: i32) -> (i32, i32) {
    %c0_i32 = arith.constant 0 : i32
    %c0_i32_0 = arith.constant 0 : i32
    %c0_i32_1 = arith.constant 0 : i32
    return %c0_i32, %c0_i32_0 : i32, i32
  }
  func.func @transform_3(%arg0: i32) -> (i32, i32) {
    %c0_i32 = arith.constant 0 : i32
    %c0_i32_0 = arith.constant 0 : i32
    %c0_i32_1 = arith.constant 0 : i32
    return %c0_i32, %c0_i32_0 : i32, i32
  }
  func.func @transform_4(%arg0: i32) -> (i32, i32) {
    %c0_i32 = arith.constant 0 : i32
    %c0_i32_0 = arith.constant 0 : i32
    %c0_i32_1 = arith.constant 0 : i32
    return %c0_i32, %c0_i32_0 : i32, i32
  }
  func.func @transform_5(%arg0: i32) -> (i32, i32) {
    %c0_i32 = arith.constant 0 : i32
    %c0_i32_0 = arith.constant 0 : i32
    %c0_i32_1 = arith.constant 0 : i32
    return %c0_i32, %c0_i32_0 : i32, i32
  }
  func.func @transform_6(%arg0: i32) -> (i32, i32) {
    %c0_i32 = arith.constant 0 : i32
    %c0_i32_0 = arith.constant 0 : i32
    %c0_i32_1 = arith.constant 0 : i32
    return %c0_i32, %c0_i32_0 : i32, i32
  }
  func.func @transform_7(%arg0: i32) -> (i32, i32) {
    %c0_i32 = arith.constant 0 : i32
    %c0_i32_0 = arith.constant 0 : i32
    return %arg0, %c0_i32 : i32, i32
  }
}

</mosaic_0001>

<bundles_post_ra>
// kernel: color_sdf_net_v2.1
= control target key start
LH: loop header
LB: loop body
LE: loop exit
PB: predicated region body
PF: predicated region fallthrough
CT: control target
= control target key end

     0   :  { %s5230_s24 = smov 0   ;;  %s6889_s0 = inlined_call_operand.vmem [shape: f32[1024,16], index: 0, kind: input, shape index: {}]   ;;  %s6890_s1 = inlined_call_operand.vmem [shape: f32[16,32], index: 1, kind: input, shape index: {}]   ;;  %s6891_s2 = inlined_call_operand.vmem [shape: f32[16,32], index: 2, kind: input, shape index: {}]   ;;  %s6892_s3 = inlined_call_operand.vmem [shape: f32[32,32], index: 3, kind: input, shape index: {}]   ;;  %s6893_s4 = inlined_call_operand.vmem [shape: f32[32,4], index: 4, kind: input, shape index: {}]   ;;  %s6894_s5 = inlined_call_operand.vmem [shape: f32[32,32], index: 5, kind: input, shape index: {}]   ;;  %s6895_s6 = inlined_call_operand.vmem [shape: f32[32,4], index: 6, kind: input, shape index: {}]   ;;  %s6896_s7 = inlined_call_operand.vmem [shape: f32[1024,4], index: 7, kind: output, shape index: {}]  }
   0x1 LB: > { %s3759_s25 = sadd.s32 4294967295, %s5188_s24   ;;  %p3763_p0 = scmp.ge.s32.totalorder %s5188_s24, 1  ;;  %s5188_s24 = sphi %s5230_s24, %s17_s24  }
   0x2   : > { %p238_p1 = scmp.lt.s32.totalorder %s5188_s24, 3 }
   0x4   : > { %p239_p2 = pnand %p3763_p0, %p238_p1 }
   0x6   : > { %242 = sbr.rel (%p239_p2) target bundleno = 937 (0x3a9), region = 48 }
   0xb   : > { %v347_v0 = vld [vmem:[%s6890_s1 + $0x8] sm:$0xff]  ;;  %v346_v1 = vld [vmem:[%s6890_s1] sm:$0xff]  ;;  %s3764_s30 = sshll.u32 %s3759_s25, 6  ;;  %vm348_vm0 = vcmask 130048   ;;  %v995_v37 = vld [vmem:[%s6892_s3 + $0x18] sm:$0xff]  ;;  %vm996_vm1 = vcmask 261120  }
   0xc   : > { %4558 = vmatprep.subr.mxu0 %v347_v0  ;;  %p271_p3 = scmp.lt.s32.totalorder %s3764_s30, 127  ;;  %v991_v2 = vld [vmem:[%s6891_s2 + $0x8] sm:$0xff]  ;;  %v990_v6 = vld [vmem:[%s6891_s2] sm:$0xff]  ;;  %4658 = vmatprep.subr.mxu1 %v995_v37  ;;  %v994_v40 = vld [vmem:[%s6892_s3 + $0x10] sm:$0xff]  ;;  %vm3638_vm2 = vcmask 31744  }
   0xd   : > { %4559 = vmatpush3.msra.mxu0 %v347_v0  ;;  %4659 = vmatpush3.msra.mxu1 %v995_v37  ;;  %v993_v42 = vld [vmem:[%s6892_s3 + $0x8] sm:$0xff]  ;;  %v992_v44 = vld [vmem:[%s6892_s3] sm:$0xff] }
   0xe   : > { %4560 = vmatprep.subr.mxu0 %v346_v1  ;;  %s6915_s30 = smov (!%p271_p3, %s3764_s30), 127  ;;  %4660 = vmatprep.subr.mxu1 %v994_v40 }
   0xf   : > { %4561 = vmatpush3.msra.mxu0 %v346_v1  ;;  %s3765_s10 = sshll.u32 %s6915_s30, 3  ;;  %4661 = vmatpush3.msra.mxu1 %v994_v40 }
  0x10   : > { %4762 = vmatprep.subr.mxu0 %v991_v2  ;;  %s5255_s13 = scalar_lea.vmem %s6889_s0, %s3765_s10  ;;  %4662 = vmatprep.subr.mxu1 %v993_v42  ;;  %s6682_s9 = scalar_lea.vmem %s6896_s7, %s3765_s10 }
  0x11   : > { %v5258_v3 = vld [vmem:[%s5255_s13] sm:$0xff]  ;;  %v5261_v4 = vld [vmem:[%s5255_s13 + $0x8] sm:$0xff]  ;;  %v5264_v5 = vld [vmem:[%s5255_s13 + $0x10] sm:$0xff]  ;;  %4663 = vmatpush3.msra.mxu1 %v993_v42 }
  0x12   : > { %4562 = vmatprep.mubr.msk.f32.mxu0 %vm348_vm0, %v5258_v3  ;;  %v5276_v7 = vld [vmem:[%s5255_s13 + $0x18] sm:$0xff]  ;;  %v5279_v8 = vld [vmem:[%s5255_s13 + $0x20] sm:$0xff]  ;;  %v5286_v9 = vld [vmem:[%s5255_s13 + $0x28] sm:$0xff]  ;;  %4664 = vmatprep.subr.mxu1 %v992_v44 }
  0x13   : > { %4563 = vmatmul.mubr.msk.f32.vlgmr.msra.gmra.mxu0 %vm348_vm0, %v5261_v4  ;;  %v5289_v10 = vld [vmem:[%s5255_s13 + $0x30] sm:$0xff]  ;;  %v5296_v11 = vld [vmem:[%s5255_s13 + $0x38] sm:$0xff]  ;;  %v5299_v12 = vld [vmem:[%s5255_s13 + $0x40] sm:$0xff]  ;;  %4665 = vmatpush3.msra.mxu1 %v992_v44 }
  0x14   : > { %4565 = vmatprep.mubr.msk.f32.mxu0 %vm348_vm0, %v5264_v5  ;;  %4763 = vmatpush3.msra.mxu0 %v991_v2  ;;  %v5306_v13 = vld [vmem:[%s5255_s13 + $0x48] sm:$0xff]  ;;  %v5309_v14 = vld [vmem:[%s5255_s13 + $0x50] sm:$0xff]  ;;  %v5316_v15 = vld [vmem:[%s5255_s13 + $0x58] sm:$0xff] }
  0x15   : > { %4764 = vmatprep.subr.mxu0 %v990_v6  ;;  %v5319_v16 = vld [vmem:[%s5255_s13 + $0x60] sm:$0xff]  ;;  %v5326_v17 = vld [vmem:[%s5255_s13 + $0x68] sm:$0xff]  ;;  %v5329_v18 = vld [vmem:[%s5255_s13 + $0x70] sm:$0xff] }
  0x16   : > { %4765 = vmatpush3.msra.mxu0 %v990_v6  ;;  %v5336_v19 = vld [vmem:[%s5255_s13 + $0x78] sm:$0xff]  ;;  %v5339_v20 = vld [vmem:[%s5255_s13 + $0x80] sm:$0xff]  ;;  %v5346_v21 = vld [vmem:[%s5255_s13 + $0x88] sm:$0xff] }
  0x17   : > { %4566 = vmatmul.mubr.msk.f32.gmra.mxu0 %vm348_vm0, %v5276_v7  ;;  %v5349_v22 = vld [vmem:[%s5255_s13 + $0x90] sm:$0xff]  ;;  %v5356_v23 = vld [vmem:[%s5255_s13 + $0x98] sm:$0xff]  ;;  %v5359_v24 = vld [vmem:[%s5255_s13 + $0xa0] sm:$0xff] }
  0x18   : > { %4568 = vmatprep.mubr.msk.f32.mxu0 %vm348_vm0, %v5279_v8  ;;  %v5366_v25 = vld [vmem:[%s5255_s13 + $0xa8] sm:$0xff]  ;;  %v5369_v26 = vld [vmem:[%s5255_s13 + $0xb0] sm:$0xff]  ;;  %v5376_v27 = vld [vmem:[%s5255_s13 + $0xb8] sm:$0xff] }
  0x19   : > { %v5379_v28 = vld [vmem:[%s5255_s13 + $0xc0] sm:$0xff]  ;;  %v5386_v29 = vld [vmem:[%s5255_s13 + $0xc8] sm:$0xff]  ;;  %v5389_v30 = vld [vmem:[%s5255_s13 + $0xd0] sm:$0xff] }
  0x1a   : > { %v5396_v31 = vld [vmem:[%s5255_s13 + $0xd8] sm:$0xff]  ;;  %v5399_v32 = vld [vmem:[%s5255_s13 + $0xe0] sm:$0xff]  ;;  %v5406_v33 = vld [vmem:[%s5255_s13 + $0xe8] sm:$0xff] }
  0x1b   : > { %4569 = vmatmul.mubr.msk.f32.gmra.mxu0 %vm348_vm0, %v5286_v9  ;;  %v5409_v34 = vld [vmem:[%s5255_s13 + $0xf0] sm:$0xff]  ;;  %v5416_v35 = vld [vmem:[%s5255_s13 + $0xf8] sm:$0xff]  ;;  %v5419_v36 = vld [vmem:[%s5255_s13 + $0x100] sm:$0xff] }
  0x1c   : > { %4571 = vmatprep.mubr.msk.f32.mxu0 %vm348_vm0, %v5289_v10  ;;  %v5429_v38 = vld [vmem:[%s5255_s13 + $0x108] sm:$0xff]  ;;  %v5432_v39 = vld [vmem:[%s5255_s13 + $0x110] sm:$0xff]  ;;  %v5442_v41 = vld [vmem:[%s5255_s13 + $0x118] sm:$0xff] }
  0x1d   : > { %v5448_v43 = vld [vmem:[%s5255_s13 + $0x120] sm:$0xff]  ;;  %v5458_v45 = vld [vmem:[%s5255_s13 + $0x128] sm:$0xff]  ;;  %v5461_v46 = vld [vmem:[%s5255_s13 + $0x130] sm:$0xff] }
  0x1e   : > { %v5468_v47 = vld [vmem:[%s5255_s13 + $0x138] sm:$0xff]  ;;  %v5471_v48 = vld [vmem:[%s5255_s13 + $0x140] sm:$0xff]  ;;  %v5478_v49 = vld [vmem:[%s5255_s13 + $0x148] sm:$0xff] }
  0x1f   : > { %4572 = vmatmul.mubr.msk.f32.gmra.mxu0 %vm348_vm0, %v5296_v11  ;;  %v5481_v50 = vld [vmem:[%s5255_s13 + $0x150] sm:$0xff]  ;;  %v5488_v51 = vld [vmem:[%s5255_s13 + $0x158] sm:$0xff]  ;;  %v5491_v52 = vld [vmem:[%s5255_s13 + $0x160] sm:$0xff] }
  0x20   : > { %4574 = vmatprep.mubr.msk.f32.mxu0 %vm348_vm0, %v5299_v12  ;;  %v5498_v53 = vld [vmem:[%s5255_s13 + $0x168] sm:$0xff]  ;;  %v5501_v54 = vld [vmem:[%s5255_s13 + $0x170] sm:$0xff]  ;;  %v5508_v55 = vld [vmem:[%s5255_s13 + $0x178] sm:$0xff] }
  0x21   : > { %v5511_v56 = vld [vmem:[%s5255_s13 + $0x180] sm:$0xff]  ;;  %v5518_v57 = vld [vmem:[%s5255_s13 + $0x188] sm:$0xff]  ;;  %v5521_v58 = vld [vmem:[%s5255_s13 + $0x190] sm:$0xff] }
  0x22   : > { %v5528_v59 = vld [vmem:[%s5255_s13 + $0x198] sm:$0xff]  ;;  %v5531_v60 = vld [vmem:[%s5255_s13 + $0x1a0] sm:$0xff]  ;;  %v5538_v61 = vld [vmem:[%s5255_s13 + $0x1a8] sm:$0xff] }
  0x23   : > { %4575 = vmatmul.mubr.msk.f32.gmra.mxu0 %vm348_vm0, %v5306_v13  ;;  %v5541_v62 = vld [vmem:[%s5255_s13 + $0x1b0] sm:$0xff]  ;;  %v5548_v63 = vld [vmem:[%s5255_s13 + $0x1b8] sm:$0xff]  ;;  %v5551_v0 = vld [vmem:[%s5255_s13 + $0x1c0] sm:$0xff] }
  0x24   : > { %4577 = vmatprep.mubr.msk.f32.mxu0 %vm348_vm0, %v5309_v14  ;;  %v5558_v1 = vld [vmem:[%s5255_s13 + $0x1c8] sm:$0xff]  ;;  %v5561_v2 = vld [vmem:[%s5255_s13 + $0x1d0] sm:$0xff]  ;;  %v5568_v6 = vld [vmem:[%s5255_s13 + $0x1d8] sm:$0xff] }
  0x25   : > { %6904 = vst [vmem:[#allocation2_spill] sm:$0xff] %v5561_v2  ;;  %v5571_v37 = vld [vmem:[%s5255_s13 + $0x1e0] sm:$0xff]  ;;  %v5578_v40 = vld [vmem:[%s5255_s13 + $0x1e8] sm:$0xff]  ;;  %v5581_v42 = vld [vmem:[%s5255_s13 + $0x1f0] sm:$0xff] }
  0x26   : > { %6905 = vst [vmem:[#allocation3_spill] sm:$0xff] %v5571_v37  ;;  %6906 = vst [vmem:[#allocation4_spill] sm:$0xff] %v5581_v42  ;;  %v2675_v44 = vld [vmem:[%s6893_s4 + $0x18] sm:$0xff] }
  0x27   : > { %4578 = vmatmul.mubr.msk.f32.gmra.mxu0 %vm348_vm0, %v5316_v15  ;;  %4966 = vmatprep.subr.mxu0 %v2675_v44 }
  0x28   : > { %4580 = vmatprep.mubr.msk.f32.mxu0 %vm348_vm0, %v5319_v16 }
  0x2b   : > { %4581 = vmatmul.mubr.msk.f32.gmra.mxu0 %vm348_vm0, %v5326_v17 }
  0x2c   : > { %4583 = vmatprep.mubr.msk.f32.mxu0 %vm348_vm0, %v5329_v18 }
  0x2f   : > { %4584 = vmatmul.mubr.msk.f32.gmra.mxu0 %vm348_vm0, %v5336_v19 }
  0x30   : > { %4586 = vmatprep.mubr.msk.f32.mxu0 %vm348_vm0, %v5339_v20 }
  0x33   : > { %4587 = vmatmul.mubr.msk.f32.gmra.mxu0 %vm348_vm0, %v5346_v21 }
  0x34   : > { %4589 = vmatprep.mubr.msk.f32.mxu0 %vm348_vm0, %v5349_v22 }
  0x37   : > { %4590 = vmatmul.mubr.msk.f32.gmra.mxu0 %vm348_vm0, %v5356_v23 }
  0x38   : > { %4592 = vmatprep.mubr.msk.f32.mxu0 %vm348_vm0, %v5359_v24 }
  0x3b   : > { %4593 = vmatmul.mubr.msk.f32.gmra.mxu0 %vm348_vm0, %v5366_v25 }
  0x3c   : > { %4595 = vmatprep.mubr.msk.f32.mxu0 %vm348_vm0, %v5369_v26 }
  0x3f   : > { %4596 = vmatmul.mubr.msk.f32.gmra.mxu0 %vm348_vm0, %v5376_v27 }
  0x40   : > { %4598 = vmatprep.mubr.msk.f32.mxu0 %vm348_vm0, %v5379_v28 }
  0x43   : > { %4599 = vmatmul.mubr.msk.f32.gmra.mxu0 %vm348_vm0, %v5386_v29 }
  0x44   : > { %4601 = vmatprep.mubr.msk.f32.mxu0 %vm348_vm0, %v5389_v30 }
  0x47   : > { %4602 = vmatmul.mubr.msk.f32.gmra.mxu0 %vm348_vm0, %v5396_v31 }
  0x48   : > { %4604 = vmatprep.mubr.msk.f32.mxu0 %vm348_vm0, %v5399_v32 }
  0x4b   : > { %4605 = vmatmul.mubr.msk.f32.gmra.mxu0 %vm348_vm0, %v5406_v33 }
  0x4c   : > { %4607 = vmatprep.mubr.msk.f32.mxu0 %vm348_vm0, %v5409_v34 }
  0x4f   : > { %4608 = vmatmul.mubr.msk.f32.gmra.mxu0 %vm348_vm0, %v5416_v35 }
  0x50   : > { %4610 = vmatprep.mubr.msk.f32.mxu0 %vm348_vm0, %v5419_v36 }
  0x53   : > { %4611 = vmatmul.mubr.msk.f32.gmra.mxu0 %vm348_vm0, %v5429_v38 }
  0x54   : > { %4613 = vmatprep.mubr.msk.f32.mxu0 %vm348_vm0, %v5432_v39 }
  0x57   : > { %4614 = vmatmul.mubr.msk.f32.gmra.mxu0 %vm348_vm0, %v5442_v41 }
  0x58   : > { %4616 = vmatprep.mubr.msk.f32.mxu0 %vm348_vm0, %v5448_v43 }
  0x5b   : > { %4617 = vmatmul.mubr.msk.f32.gmra.mxu0 %vm348_vm0, %v5458_v45 }
  0x5c   : > { %4619 = vmatprep.mubr.msk.f32.mxu0 %vm348_vm0, %v5461_v46 }
  0x5f   : > { %4620 = vmatmul.mubr.msk.f32.gmra.mxu0 %vm348_vm0, %v5468_v47 }
  0x60   : > { %4622 = vmatprep.mubr.msk.f32.mxu0 %vm348_vm0, %v5471_v48 }
  0x63   : > { %4623 = vmatmul.mubr.msk.f32.gmra.mxu0 %vm348_vm0, %v5478_v49 }
  0x64   : > { %4625 = vmatprep.mubr.msk.f32.mxu0 %vm348_vm0, %v5481_v50 }
  0x67   : > { %4626 = vmatmul.mubr.msk.f32.gmra.mxu0 %vm348_vm0, %v5488_v51 }
  0x68   : > { %4628 = vmatprep.mubr.msk.f32.mxu0 %vm348_vm0, %v5491_v52 }
  0x6b   : > { %4629 = vmatmul.mubr.msk.f32.gmra.mxu0 %vm348_vm0, %v5498_v53 }
  0x6c   : > { %4631 = vmatprep.mubr.msk.f32.mxu0 %vm348_vm0, %v5501_v54 }
  0x6f   : > { %4632 = vmatmul.mubr.msk.f32.gmra.mxu0 %vm348_vm0, %v5508_v55 }
  0x70   : > { %4634 = vmatprep.mubr.msk.f32.mxu0 %vm348_vm0, %v5511_v56 }
  0x73   : > { %4635 = vmatmul.mubr.msk.f32.gmra.mxu0 %vm348_vm0, %v5518_v57 }
  0x74   : > { %4637 = vmatprep.mubr.msk.f32.mxu0 %vm348_vm0, %v5521_v58 }
  0x77   : > { %4638 = vmatmul.mubr.msk.f32.gmra.mxu0 %vm348_vm0, %v5528_v59 }
  0x78   : > { %4640 = vmatprep.mubr.msk.f32.mxu0 %vm348_vm0, %v5531_v60 }
  0x7b   : > { %4641 = vmatmul.mubr.msk.f32.gmra.mxu0 %vm348_vm0, %v5538_v61 }
  0x7c   : > { %4643 = vmatprep.mubr.msk.f32.mxu0 %vm348_vm0, %v5541_v62 }
  0x7f   : > { %4644 = vmatmul.mubr.msk.f32.gmra.mxu0 %vm348_vm0, %v5548_v63 }
  0x80   : > { %4646 = vmatprep.mubr.msk.f32.mxu0 %vm348_vm0, %v5551_v0 }
  0x83   : > { %4647 = vmatmul.mubr.msk.f32.gmra.mxu0 %vm348_vm0, %v5558_v1 }
  0x84   : > { %4649 = vmatprep.mubr.msk.f32.mxu0 %vm348_vm0, %v5561_v2  ;;  %v5591_v2 = vld [vmem:[%s5255_s13 + $0x1f8] sm:$0xff] }
  0x87   : > { %4650 = vmatmul.mubr.msk.f32.gmra.mxu0 %vm348_vm0, %v5568_v6 }
  0x88   : > { %4652 = vmatprep.mubr.msk.f32.mxu0 %vm348_vm0, %v5571_v37  ;;  %v2674_v37 = vld [vmem:[%s6893_s4 + $0x10] sm:$0xff] }
  0x8b   : > { %4653 = vmatmul.mubr.msk.f32.gmra.mxu0 %vm348_vm0, %v5578_v40 }
  0x8c   : > { %4655 = vmatprep.mubr.msk.f32.mxu0 %vm348_vm0, %v5581_v42  ;;  %v2673_v42 = vld [vmem:[%s6893_s4 + $0x8] sm:$0xff] }
  0x8f   : > { %4656 = vmatmul.mubr.msk.f32.gmra.mxu0 %vm348_vm0, %v5591_v2 }
  0x90   : > { %4766 = vmatprep.mubr.msk.f32.mxu0 %vm348_vm0, %v5258_v3  ;;  %v2672_v3 = vld [vmem:[%s6893_s4] sm:$0xff] }
  0x93   : > { %4767 = vmatmul.mubr.msk.f32.vlgmr.msra.gmra.mxu0 %vm348_vm0, %v5261_v4  ;;  %v2026_v4 = vld [vmem:[%s6894_s5 + $0x18] sm:$0xff] }
  0x94   : > { %4769 = vmatprep.mubr.msk.f32.mxu0 %vm348_vm0, %v5264_v5  ;;  %4967 = vmatpush3.msra.mxu0 %v2675_v44 }
  0x95   : > { %4968 = vmatprep.subr.mxu0 %v2674_v37  ;;  %4862 = vmatprep.subr.mxu1 %v2026_v4 }
  0x96   : > { %4969 = vmatpush3.msra.mxu0 %v2674_v37 }
  0x97   : > { %4770 = vmatmul.mubr.msk.f32.gmra.mxu0 %vm348_vm0, %v5276_v7  ;;  %4970 = vmatprep.subr.mxu0 %v2673_v42 }
  0x98   : > { %4772 = vmatprep.mubr.msk.f32.mxu0 %vm348_vm0, %v5279_v8  ;;  %4971 = vmatpush3.msra.mxu0 %v2673_v42 }
  0x99   : > { %4972 = vmatprep.subr.mxu0 %v2672_v3 }
  0x9a   : > { %4973 = vmatpush3.msra.mxu0 %v2672_v3 }
  0x9b   : > { %4773 = vmatmul.mubr.msk.f32.gmra.mxu0 %vm348_vm0, %v5286_v9 }
  0x9c   : > { %4775 = vmatprep.mubr.msk.f32.mxu0 %vm348_vm0, %v5289_v10 }
  0x9f   : > { %4776 = vmatmul.mubr.msk.f32.gmra.mxu0 %vm348_vm0, %v5296_v11  ;;  %v2025_v11 = vld [vmem:[%s6894_s5 + $0x10] sm:$0xff] }
  0xa0   : > { %4778 = vmatprep.mubr.msk.f32.mxu0 %vm348_vm0, %v5299_v12 }
  0xa3   : > { %4779 = vmatmul.mubr.msk.f32.gmra.mxu0 %vm348_vm0, %v5306_v13 }
  0xa4   : > { %4781 = vmatprep.mubr.msk.f32.mxu0 %vm348_vm0, %v5309_v14 }
  0xa7   : > { %4782 = vmatmul.mubr.msk.f32.gmra.mxu0 %vm348_vm0, %v5316_v15 }
  0xa8   : > { %4784 = vmatprep.mubr.msk.f32.mxu0 %vm348_vm0, %v5319_v16 }
  0xab   : > { %4785 = vmatmul.mubr.msk.f32.gmra.mxu0 %vm348_vm0, %v5326_v17 }
  0xac   : > { %4787 = vmatprep.mubr.msk.f32.mxu0 %vm348_vm0, %v5329_v18 }
  0xaf   : > { %4788 = vmatmul.mubr.msk.f32.gmra.mxu0 %vm348_vm0, %v5336_v19 }
  0xb0   : > { %4790 = vmatprep.mubr.msk.f32.mxu0 %vm348_vm0, %v5339_v20  ;;  %v2024_v20 = vld [vmem:[%s6894_s5 + $0x8] sm:$0xff] }
  0xb3   : > { %4791 = vmatmul.mubr.msk.f32.gmra.mxu0 %vm348_vm0, %v5346_v21 }
  0xb4   : > { %4793 = vmatprep.mubr.msk.f32.mxu0 %vm348_vm0, %v5349_v22 }
  0xb7   : > { %4794 = vmatmul.mubr.msk.f32.gmra.mxu0 %vm348_vm0, %v5356_v23 }
  0xb8   : > { %4796 = vmatprep.mubr.msk.f32.mxu0 %vm348_vm0, %v5359_v24 }
  0xbb   : > { %4797 = vmatmul.mubr.msk.f32.gmra.mxu0 %vm348_vm0, %v5366_v25 }
  0xbc   : > { %4799 = vmatprep.mubr.msk.f32.mxu0 %vm348_vm0, %v5369_v26 }
  0xbf   : > { %4800 = vmatmul.mubr.msk.f32.gmra.mxu0 %vm348_vm0, %v5376_v27 }
  0xc0   : > { %4802 = vmatprep.mubr.msk.f32.mxu0 %vm348_vm0, %v5379_v28 }
  0xc3   : > { %4803 = vmatmul.mubr.msk.f32.gmra.mxu0 %vm348_vm0, %v5386_v29 }
  0xc4   : > { %4805 = vmatprep.mubr.msk.f32.mxu0 %vm348_vm0, %v5389_v30 }
  0xc7   : > { %4806 = vmatmul.mubr.msk.f32.gmra.mxu0 %vm348_vm0, %v5396_v31 }
  0xc8   : > { %4808 = vmatprep.mubr.msk.f32.mxu0 %vm348_vm0, %v5399_v32 }
  0xcb   : > { %4809 = vmatmul.mubr.msk.f32.gmra.mxu0 %vm348_vm0, %v5406_v33 }
  0xcc   : > { %4811 = vmatprep.mubr.msk.f32.mxu0 %vm348_vm0, %v5409_v34 }
  0xcf   : > { %4812 = vmatmul.mubr.msk.f32.gmra.mxu0 %vm348_vm0, %v5416_v35 }
  0xd0   : > { %4814 = vmatprep.mubr.msk.f32.mxu0 %vm348_vm0, %v5419_v36 }
  0xd3   : > { %v5673_v5 = vpop.f32.mrf.mxu0  ;;  %4815 = vmatmul.mubr.msk.f32.gmra.mxu0 %vm348_vm0, %v5429_v38 }
  0xd4   : > { %4817 = vmatprep.mubr.msk.f32.mxu0 %vm348_vm0, %v5432_v39  ;;  %v927_v9 = vmax.f32 %v5673_v5, 0.0 }
  0xd5   : > { %v5679_v7 = vpop.f32.mrf.mxu0 }
  0xd6   : > { %v926_v8 = vmax.f32 %v5679_v7, 0.0 }
  0xd7   : > { %v5683_v10 = vpop.f32.mrf.mxu0  ;;  %4818 = vmatmul.mubr.msk.f32.gmra.mxu0 %vm348_vm0, %v5442_v41 }
  0xd8   : > { %4666 = vmatprep.mubr.msk.f32.mxu1 %vm996_vm1, %v926_v8  ;;  %4820 = vmatprep.mubr.msk.f32.mxu0 %vm348_vm0, %v5448_v43  ;;  %v929_v14 = vmax.f32 %v5683_v10, 0.0 }
  0xd9   : > { %v5695_v12 = vpop.f32.mrf.mxu0  ;;  %4667 = vmatmul.mubr.msk.f32.vlgmr.msra.gmra.mxu1 %vm996_vm1, %v927_v9 }
  0xda   : > { %v928_v13 = vmax.f32 %v5695_v12, 0.0  ;;  %4863 = vmatpush3.msra.mxu1 %v2026_v4 }
  0xdb   : > { %v5702_v15 = vpop.f32.mrf.mxu0  ;;  %4821 = vmatmul.mubr.msk.f32.gmra.mxu0 %vm348_vm0, %v5458_v45  ;;  %4864 = vmatprep.subr.mxu1 %v2025_v11 }
  0xdc   : > { %4669 = vmatprep.mubr.msk.f32.mxu1 %vm996_vm1, %v928_v13  ;;  %4823 = vmatprep.mubr.msk.f32.mxu0 %vm348_vm0, %v5461_v46  ;;  %v931_v18 = vmax.f32 %v5702_v15, 0.0 }
  0xdd   : > { %v5711_v16 = vpop.f32.mrf.mxu0  ;;  %4670 = vmatmul.mubr.msk.f32.gmra.mxu1 %vm996_vm1, %v929_v14 }
  0xde   : > { %v930_v17 = vmax.f32 %v5711_v16, 0.0  ;;  %4865 = vmatpush3.msra.mxu1 %v2025_v11 }
  0xdf   : > { %v5718_v19 = vpop.f32.mrf.mxu0  ;;  %4824 = vmatmul.mubr.msk.f32.gmra.mxu0 %vm348_vm0, %v5468_v47  ;;  %4866 = vmatprep.subr.mxu1 %v2024_v20 }
  0xe0   : > { %4672 = vmatprep.mubr.msk.f32.mxu1 %vm996_vm1, %v930_v17  ;;  %4826 = vmatprep.mubr.msk.f32.mxu0 %vm348_vm0, %v5471_v48  ;;  %v933_v23 = vmax.f32 %v5718_v19, 0.0 }
  0xe1   : > { %v5730_v21 = vpop.f32.mrf.mxu0  ;;  %4673 = vmatmul.mubr.msk.f32.gmra.mxu1 %vm996_vm1, %v931_v18 }
  0xe2   : > { %v932_v22 = vmax.f32 %v5730_v21, 0.0  ;;  %4867 = vmatpush3.msra.mxu1 %v2024_v20 }
  0xe3   : > { %v5737_v24 = vpop.f32.mrf.mxu0  ;;  %4827 = vmatmul.mubr.msk.f32.gmra.mxu0 %vm348_vm0, %v5478_v49 }
  0xe4   : > { %4675 = vmatprep.mubr.msk.f32.mxu1 %vm996_vm1, %v932_v22  ;;  %4829 = vmatprep.mubr.msk.f32.mxu0 %vm348_vm0, %v5481_v50  ;;  %v935_v27 = vmax.f32 %v5737_v24, 0.0 }
  0xe5   : > { %v5746_v25 = vpop.f32.mrf.mxu0  ;;  %4676 = vmatmul.mubr.msk.f32.gmra.mxu1 %vm996_vm1, %v933_v23 }
  0xe6   : > { %v934_v26 = vmax.f32 %v5746_v25, 0.0 }
  0xe7   : > { %v5753_v28 = vpop.f32.mrf.mxu0  ;;  %4830 = vmatmul.mubr.msk.f32.gmra.mxu0 %vm348_vm0, %v5488_v51 }
  0xe8   : > { %4678 = vmatprep.mubr.msk.f32.mxu1 %vm996_vm1, %v934_v26  ;;  %4832 = vmatprep.mubr.msk.f32.mxu0 %vm348_vm0, %v5491_v52  ;;  %v937_v31 = vmax.f32 %v5753_v28, 0.0 }
  0xe9   : > { %v5762_v29 = vpop.f32.mrf.mxu0  ;;  %4679 = vmatmul.mubr.msk.f32.gmra.mxu1 %vm996_vm1, %v935_v27 }
  0xea   : > { %v936_v30 = vmax.f32 %v5762_v29, 0.0 }
  0xeb   : > { %v5769_v32 = vpop.f32.mrf.mxu0  ;;  %4833 = vmatmul.mubr.msk.f32.gmra.mxu0 %vm348_vm0, %v5498_v53 }
  0xec   : > { %4681 = vmatprep.mubr.msk.f32.mxu1 %vm996_vm1, %v936_v30  ;;  %4835 = vmatprep.mubr.msk.f32.mxu0 %vm348_vm0, %v5501_v54  ;;  %v939_v35 = vmax.f32 %v5769_v32, 0.0 }
  0xed   : > { %v5778_v33 = vpop.f32.mrf.mxu0  ;;  %4682 = vmatmul.mubr.msk.f32.gmra.mxu1 %vm996_vm1, %v937_v31 }
  0xee   : > { %v938_v34 = vmax.f32 %v5778_v33, 0.0 }
  0xef   : > { %v5785_v36 = vpop.f32.mrf.mxu0  ;;  %4836 = vmatmul.mubr.msk.f32.gmra.mxu0 %vm348_vm0, %v5508_v55 }
  0xf0   : > { %4684 = vmatprep.mubr.msk.f32.mxu1 %vm996_vm1, %v938_v34  ;;  %4838 = vmatprep.mubr.msk.f32.mxu0 %vm348_vm0, %v5511_v56  ;;  %v941_v41 = vmax.f32 %v5785_v36, 0.0 }
  0xf1   : > { %v5794_v38 = vpop.f32.mrf.mxu0  ;;  %4685 = vmatmul.mubr.msk.f32.gmra.mxu1 %vm996_vm1, %v939_v35 }
  0xf2   : > { %v940_v39 = vmax.f32 %v5794_v38, 0.0 }
  0xf3   : > { %v5801_v43 = vpop.f32.mrf.mxu0  ;;  %4839 = vmatmul.mubr.msk.f32.gmra.mxu0 %vm348_vm0, %v5518_v57  ;;  %v2023_v57 = vld [vmem:[%s6894_s5] sm:$0xff] }
  0xf4   : > { %4687 = vmatprep.mubr.msk.f32.mxu1 %vm996_vm1, %v940_v39  ;;  %4841 = vmatprep.mubr.msk.f32.mxu0 %vm348_vm0, %v5521_v58  ;;  %v943_v47 = vmax.f32 %v5801_v43, 0.0 }
  0xf5   : > { %v5810_v45 = vpop.f32.mrf.mxu0  ;;  %4688 = vmatmul.mubr.msk.f32.gmra.mxu1 %vm996_vm1, %v941_v41  ;;  %4868 = vmatprep.subr.mxu1 %v2023_v57 }
  0xf6   : > { %v942_v46 = vmax.f32 %v5810_v45, 0.0  ;;  %4869 = vmatpush3.msra.mxu1 %v2023_v57 }
  0xf7   : > { %v5817_v48 = vpop.f32.mrf.mxu0  ;;  %4842 = vmatmul.mubr.msk.f32.gmra.mxu0 %vm348_vm0, %v5528_v59 }
  0xf8   : > { %4690 = vmatprep.mubr.msk.f32.mxu1 %vm996_vm1, %v942_v46  ;;  %4844 = vmatprep.mubr.msk.f32.mxu0 %vm348_vm0, %v5531_v60  ;;  %v945_v51 = vmax.f32 %v5817_v48, 0.0 }
  0xf9   : > { %v5826_v49 = vpop.f32.mrf.mxu0  ;;  %4691 = vmatmul.mubr.msk.f32.gmra.mxu1 %vm996_vm1, %v943_v47 }
  0xfa   : > { %v944_v50 = vmax.f32 %v5826_v49, 0.0 }
  0xfb   : > { %v5833_v52 = vpop.f32.mrf.mxu0  ;;  %4845 = vmatmul.mubr.msk.f32.gmra.mxu0 %vm348_vm0, %v5538_v61 }
  0xfc   : > { %4693 = vmatprep.mubr.msk.f32.mxu1 %vm996_vm1, %v944_v50  ;;  %4847 = vmatprep.mubr.msk.f32.mxu0 %vm348_vm0, %v5541_v62  ;;  %v947_v55 = vmax.f32 %v5833_v52, 0.0  ;;  %v6907_v62 = vld [vmem:[#allocation2_spill] sm:$0xff] }
  0xfd   : > { %v5842_v53 = vpop.f32.mrf.mxu0  ;;  %4694 = vmatmul.mubr.msk.f32.gmra.mxu1 %vm996_vm1, %v945_v51 }
  0xfe   : > { %v946_v54 = vmax.f32 %v5842_v53, 0.0 }
  0xff   : > { %v5849_v56 = vpop.f32.mrf.mxu0  ;;  %4848 = vmatmul.mubr.msk.f32.gmra.mxu0 %vm348_vm0, %v5548_v63 }
 0x100   : > { %4696 = vmatprep.mubr.msk.f32.mxu1 %vm996_vm1, %v946_v54  ;;  %4850 = vmatprep.mubr.msk.f32.mxu0 %vm348_vm0, %v5551_v0  ;;  %v949_v60 = vmax.f32 %v5849_v56, 0.0 }
 0x101   : > { %v5861_v58 = vpop.f32.mrf.mxu0  ;;  %4697 = vmatmul.mubr.msk.f32.gmra.mxu1 %vm996_vm1, %v947_v55 }
 0x102   : > { %v948_v59 = vmax.f32 %v5861_v58, 0.0 }
 0x103   : > { %v5868_v61 = vpop.f32.mrf.mxu0  ;;  %4851 = vmatmul.mubr.msk.f32.gmra.mxu0 %vm348_vm0, %v5558_v1  ;;  %v6908_v1 = vld [vmem:[#allocation3_spill] sm:$0xff] }
 0x104   : > { %4699 = vmatprep.mubr.msk.f32.mxu1 %vm996_vm1, %v948_v59  ;;  %4853 = vmatprep.mubr.msk.f32.mxu0 %vm348_vm0, %v6907_v62  ;;  %v951_v37 = vmax.f32 %v5868_v61, 0.0 }
 0x105   : > { %v5877_v63 = vpop.f32.mrf.mxu0  ;;  %4700 = vmatmul.mubr.msk.f32.gmra.mxu1 %vm996_vm1, %v949_v60 }
 0x106   : > { %v950_v0 = vmax.f32 %v5877_v63, 0.0 }
 0x107   : > { %v5884_v42 = vpop.f32.mrf.mxu0  ;;  %4854 = vmatmul.mubr.msk.f32.gmra.mxu0 %vm348_vm0, %v5568_v6  ;;  %v6909_v6 = vld [vmem:[#allocation4_spill] sm:$0xff] }
 0x108   : > { %4702 = vmatprep.mubr.msk.f32.mxu1 %vm996_vm1, %v950_v0  ;;  %4856 = vmatprep.mubr.msk.f32.mxu0 %vm348_vm0, %v6908_v1  ;;  %v6900_v4 = vmax.f32 %v5884_v42, 0.0 }
 0x109   : > { %v5893_v44 = vpop.f32.mrf.mxu0  ;;  %4703 = vmatmul.mubr.msk.f32.gmra.mxu1 %vm996_vm1, %v951_v37 }
 0x10a   : > { %v6901_v3 = vmax.f32 %v5893_v44, 0.0 }
 0x10b   : > { %v5900_v11 = vpop.f32.mrf.mxu0  ;;  %4857 = vmatmul.mubr.msk.f32.gmra.mxu0 %vm348_vm0, %v5578_v40 }
 0x10c   : > { %4705 = vmatprep.mubr.msk.f32.mxu1 %vm996_vm1, %v6901_v3  ;;  %4859 = vmatprep.mubr.msk.f32.mxu0 %vm348_vm0, %v6909_v6  ;;  %v955_v62 = vmax.f32 %v5900_v11, 0.0 }
 0x10d   : > { %v5909_v20 = vpop.f32.mrf.mxu0  ;;  %4706 = vmatmul.mubr.msk.f32.gmra.mxu1 %vm996_vm1, %v6900_v4 }
 0x10e   : > { %v954_v57 = vmax.f32 %v5909_v20, 0.0 }
 0x10f   : > { %v5916_v1 = vpop.f32.mrf.mxu0  ;;  %4860 = vmatmul.mubr.msk.f32.gmra.mxu0 %vm348_vm0, %v5591_v2 }
 0x110   : > { %4708 = vmatprep.mubr.msk.f32.mxu1 %vm996_vm1, %v954_v57  ;;  %4974 = vmatprep.mubr.msk.f32.mxu0 %vm996_vm1, %v926_v8  ;;  %v957_v4 = vmax.f32 %v5916_v1, 0.0 }
 0x111   : > { %v5926_v40 = vpop.f32.mrf.mxu0  ;;  %4709 = vmatmul.mubr.msk.f32.gmra.mxu1 %vm996_vm1, %v955_v62 }
 0x112   : > { %v956_v6 = vmax.f32 %v5926_v40, 0.0 }
 0x113   : > { %v5933_v3 = vpop.f32.mrf.mxu0  ;;  %4975 = vmatmul.mubr.msk.f32.vlgmr.msra.gmra.mxu0 %vm996_vm1, %v927_v9 }
 0x114   : > { %4711 = vmatprep.mubr.msk.f32.mxu1 %vm996_vm1, %v956_v6  ;;  %4977 = vmatprep.mubr.msk.f32.mxu0 %vm996_vm1, %v928_v13  ;;  %v959_v5 = vmax.f32 %v5933_v3, 0.0 }
 0x115   : > { %v5944_v2 = vpop.f32.mrf.mxu0  ;;  %4712 = vmatmul.mubr.msk.f32.gmra.mxu1 %vm996_vm1, %v957_v4 }
 0x116   : > { %v958_v7 = vmax.f32 %v5944_v2, 0.0 }
 0x117   : > { %v5951_v8 = vpop.f32.mrf.mxu0  ;;  %4978 = vmatmul.mubr.msk.f32.gmra.mxu0 %vm996_vm1, %v929_v14 }
 0x118   : > { %4714 = vmatprep.mubr.msk.f32.mxu1 %vm996_vm1, %v958_v7  ;;  %4980 = vmatprep.mubr.msk.f32.mxu0 %vm996_vm1, %v930_v17  ;;  %v961_v10 = vmax.f32 %v5951_v8, 0.0 }
 0x119   : > { %v5962_v9 = vpop.f32.mrf.mxu0  ;;  %4715 = vmatmul.mubr.msk.f32.gmra.mxu1 %vm996_vm1, %v959_v5 }
 0x11a   : > { %v960_v12 = vmax.f32 %v5962_v9, 0.0 }
 0x11b   : > { %v5969_v13 = vpop.f32.mrf.mxu0  ;;  %4981 = vmatmul.mubr.msk.f32.gmra.mxu0 %vm996_vm1, %v931_v18 }
 0x11c   : > { %4717 = vmatprep.mubr.msk.f32.mxu1 %vm996_vm1, %v960_v12  ;;  %4983 = vmatprep.mubr.msk.f32.mxu0 %vm996_vm1, %v932_v22  ;;  %v963_v15 = vmax.f32 %v5969_v13, 0.0 }
 0x11d   : > { %v5980_v14 = vpop.f32.mrf.mxu0  ;;  %4718 = vmatmul.mubr.msk.f32.gmra.mxu1 %vm996_vm1, %v961_v10 }
 0x11e   : > { %v962_v16 = vmax.f32 %v5980_v14, 0.0  ;;  %v2671_v14 = vld [vmem:[%s6895_s6 + $0x18] sm:$0xff] }
 0x11f   : > { %v5987_v17 = vpop.f32.mrf.mxu0  ;;  %4984 = vmatmul.mubr.msk.f32.gmra.mxu0 %vm996_vm1, %v933_v23  ;;  %5070 = vmatprep.subr.mxu1 %v2671_v14 }
 0x120   : > { %4720 = vmatprep.mubr.msk.f32.mxu1 %vm996_vm1, %v962_v16  ;;  %4986 = vmatprep.mubr.msk.f32.mxu0 %vm996_vm1, %v934_v26  ;;  %v965_v19 = vmax.f32 %v5987_v17, 0.0 }
 0x121   : > { %v5998_v18 = vpop.f32.mrf.mxu0  ;;  %4721 = vmatmul.mubr.msk.f32.gmra.mxu1 %vm996_vm1, %v963_v15 }
 0x122   : > { %v964_v21 = vmax.f32 %v5998_v18, 0.0 }
 0x123   : > { %v6005_v22 = vpop.f32.mrf.mxu0  ;;  %4987 = vmatmul.mubr.msk.f32.gmra.mxu0 %vm996_vm1, %v935_v27 }
 0x124   : > { %4723 = vmatprep.mubr.msk.f32.mxu1 %vm996_vm1, %v964_v21  ;;  %4989 = vmatprep.mubr.msk.f32.mxu0 %vm996_vm1, %v936_v30  ;;  %v967_v24 = vmax.f32 %v6005_v22, 0.0 }
 0x125   : > { %v6016_v23 = vpop.f32.mrf.mxu0  ;;  %4724 = vmatmul.mubr.msk.f32.gmra.mxu1 %vm996_vm1, %v965_v19 }
 0x126   : > { %v966_v25 = vmax.f32 %v6016_v23, 0.0 }
 0x127   : > { %v6023_v26 = vpop.f32.mrf.mxu0  ;;  %4990 = vmatmul.mubr.msk.f32.gmra.mxu0 %vm996_vm1, %v937_v31 }
 0x128   : > { %4726 = vmatprep.mubr.msk.f32.mxu1 %vm996_vm1, %v966_v25  ;;  %4992 = vmatprep.mubr.msk.f32.mxu0 %vm996_vm1, %v938_v34  ;;  %v969_v28 = vmax.f32 %v6023_v26, 0.0 }
 0x129   : > { %v6034_v27 = vpop.f32.mrf.mxu0  ;;  %4727 = vmatmul.mubr.msk.f32.gmra.mxu1 %vm996_vm1, %v967_v24 }
 0x12a   : > { %v968_v29 = vmax.f32 %v6034_v27, 0.0 }
 0x12b   : > { %v6041_v30 = vpop.f32.mrf.mxu0  ;;  %4993 = vmatmul.mubr.msk.f32.gmra.mxu0 %vm996_vm1, %v939_v35 }
 0x12c   : > { %4729 = vmatprep.mubr.msk.f32.mxu1 %vm996_vm1, %v968_v29  ;;  %4995 = vmatprep.mubr.msk.f32.mxu0 %vm996_vm1, %v940_v39  ;;  %v971_v32 = vmax.f32 %v6041_v30, 0.0 }
 0x12d   : > { %v6052_v31 = vpop.f32.mrf.mxu0  ;;  %4730 = vmatmul.mubr.msk.f32.gmra.mxu1 %vm996_vm1, %v969_v28 }
 0x12e   : > { %v970_v33 = vmax.f32 %v6052_v31, 0.0 }
 0x12f   : > { %v6059_v34 = vpop.f32.mrf.mxu0  ;;  %4996 = vmatmul.mubr.msk.f32.gmra.mxu0 %vm996_vm1, %v941_v41 }
 0x130   : > { %4732 = vmatprep.mubr.msk.f32.mxu1 %vm996_vm1, %v970_v33  ;;  %4998 = vmatprep.mubr.msk.f32.mxu0 %vm996_vm1, %v942_v46  ;;  %v973_v36 = vmax.f32 %v6059_v34, 0.0 }
 0x131   : > { %v6070_v35 = vpop.f32.mrf.mxu0  ;;  %4733 = vmatmul.mubr.msk.f32.gmra.mxu1 %vm996_vm1, %v971_v32 }
 0x132   : > { %v972_v38 = vmax.f32 %v6070_v35, 0.0 }
 0x133   : > { %v6077_v39 = vpop.f32.mrf.mxu0  ;;  %4999 = vmatmul.mubr.msk.f32.gmra.mxu0 %vm996_vm1, %v943_v47 }
 0x134   : > { %4735 = vmatprep.mubr.msk.f32.mxu1 %vm996_vm1, %v972_v38  ;;  %5001 = vmatprep.mubr.msk.f32.mxu0 %vm996_vm1, %v944_v50  ;;  %v975_v43 = vmax.f32 %v6077_v39, 0.0 }
 0x135   : > { %v6088_v41 = vpop.f32.mrf.mxu0  ;;  %4736 = vmatmul.mubr.msk.f32.gmra.mxu1 %vm996_vm1, %v973_v36 }
 0x136   : > { %v974_v45 = vmax.f32 %v6088_v41, 0.0 }
 0x137   : > { %v6095_v46 = vpop.f32.mrf.mxu0  ;;  %5002 = vmatmul.mubr.msk.f32.gmra.mxu0 %vm996_vm1, %v945_v51 }
 0x138   : > { %4738 = vmatprep.mubr.msk.f32.mxu1 %vm996_vm1, %v974_v45  ;;  %5004 = vmatprep.mubr.msk.f32.mxu0 %vm996_vm1, %v946_v54  ;;  %v977_v48 = vmax.f32 %v6095_v46, 0.0 }
 0x139   : > { %v6106_v47 = vpop.f32.mrf.mxu0  ;;  %4739 = vmatmul.mubr.msk.f32.gmra.mxu1 %vm996_vm1, %v975_v43 }
 0x13a   : > { %v976_v49 = vmax.f32 %v6106_v47, 0.0 }
 0x13b   : > { %v6113_v50 = vpop.f32.mrf.mxu0  ;;  %5005 = vmatmul.mubr.msk.f32.gmra.mxu0 %vm996_vm1, %v947_v55 }
 0x13c   : > { %4741 = vmatprep.mubr.msk.f32.mxu1 %vm996_vm1, %v976_v49  ;;  %5007 = vmatprep.mubr.msk.f32.mxu0 %vm996_vm1, %v948_v59  ;;  %v6902_v52 = vmax.f32 %v6113_v50, 0.0  ;;  %v6912_v26 = vmax.f32 %v6113_v50, 0.0 }
 0x13d   : > { %v6124_v51 = vpop.f32.mrf.mxu0  ;;  %4742 = vmatmul.mubr.msk.f32.gmra.mxu1 %vm996_vm1, %v977_v48 }
 0x13e   : > { %v978_v53 = vmax.f32 %v6124_v51, 0.0 }
 0x13f   : > { %v6131_v54 = vpop.f32.mrf.mxu0  ;;  %5008 = vmatmul.mubr.msk.f32.gmra.mxu0 %vm996_vm1, %v949_v60  ;;  %v6910_v60 = vmax.f32 %v5893_v44, 0.0 }
 0x140   : > { %4744 = vmatprep.mubr.msk.f32.mxu1 %vm996_vm1, %v978_v53  ;;  %5010 = vmatprep.mubr.msk.f32.mxu0 %vm996_vm1, %v950_v0  ;;  %v6903_v56 = vmax.f32 %v6131_v54, 0.0 }
 0x141   : > { %v6142_v55 = vpop.f32.mrf.mxu0  ;;  %4745 = vmatmul.mubr.msk.f32.gmra.mxu1 %vm996_vm1, %v6902_v52 }
 0x142   : > { %v980_v58 = vmax.f32 %v6142_v55, 0.0  ;;  %v2670_v55 = vld [vmem:[%s6895_s6 + $0x10] sm:$0xff] }
 0x143   : > { %v6149_v59 = vpop.f32.mrf.mxu0  ;;  %5011 = vmatmul.mubr.msk.f32.gmra.mxu0 %vm996_vm1, %v951_v37  ;;  %v6911_v37 = vmax.f32 %v5884_v42, 0.0 }
 0x144   : > { %4747 = vmatprep.mubr.msk.f32.mxu1 %vm996_vm1, %v980_v58  ;;  %5013 = vmatprep.mubr.msk.f32.mxu0 %vm996_vm1, %v6910_v60  ;;  %v983_v61 = vmax.f32 %v6149_v59, 0.0 }
 0x145   : > { %v6160_v63 = vpop.f32.mrf.mxu0  ;;  %4748 = vmatmul.mubr.msk.f32.gmra.mxu1 %vm996_vm1, %v6903_v56 }
 0x146   : > { %v982_v0 = vmax.f32 %v6160_v63, 0.0 }
 0x147   : > { %v6167_v52 = vpop.f32.mrf.mxu0  ;;  %5014 = vmatmul.mubr.msk.f32.gmra.mxu0 %vm996_vm1, %v6911_v37 }
 0x148   : > { %4750 = vmatprep.mubr.msk.f32.mxu1 %vm996_vm1, %v982_v0  ;;  %5016 = vmatprep.mubr.msk.f32.mxu0 %vm996_vm1, %v954_v57  ;;  %v985_v42 = vmax.f32 %v6167_v52, 0.0 }
 0x149   : > { %v6178_v44 = vpop.f32.mrf.mxu0  ;;  %4751 = vmatmul.mubr.msk.f32.gmra.mxu1 %vm996_vm1, %v983_v61 }
 0x14a   : > { %v984_v60 = vmax.f32 %v6178_v44, 0.0 }
 0x14b   : > { %v6185_v56 = vpop.f32.mrf.mxu0  ;;  %5017 = vmatmul.mubr.msk.f32.gmra.mxu0 %vm996_vm1, %v955_v62 }
 0x14c   : > { %4753 = vmatprep.mubr.msk.f32.mxu1 %vm996_vm1, %v984_v60  ;;  %5019 = vmatprep.mubr.msk.f32.mxu0 %vm996_vm1, %v956_v6  ;;  %v987_v11 = vmax.f32 %v6185_v56, 0.0 }
 0x14d   : > { %v6196_v20 = vpop.f32.mrf.mxu0  ;;  %4754 = vmatmul.mubr.msk.f32.gmra.mxu1 %vm996_vm1, %v985_v42 }
 0x14e   : > { %v986_v57 = vmax.f32 %v6196_v20, 0.0 }
 0x14f   : > { %v6203_v37 = vpop.f32.mrf.mxu0  ;;  %5020 = vmatmul.mubr.msk.f32.gmra.mxu0 %vm996_vm1, %v957_v4 }
 0x150   : > { %4756 = vmatprep.mubr.msk.f32.mxu1 %vm996_vm1, %v986_v57  ;;  %5022 = vmatprep.mubr.msk.f32.mxu0 %vm996_vm1, %v958_v7  ;;  %v989_v1 = vmax.f32 %v6203_v37, 0.0 }
 0x151   : > { %v6214_v62 = vpop.f32.mrf.mxu0  ;;  %4757 = vmatmul.mubr.msk.f32.gmra.mxu1 %vm996_vm1, %v987_v11 }
 0x152   : > { %v988_v40 = vmax.f32 %v6214_v62, 0.0 }
 0x153   : > { %v6221_v6 = vpop.f32.mrf.mxu0  ;;  %5023 = vmatmul.mubr.msk.f32.gmra.mxu0 %vm996_vm1, %v959_v5 }
 0x154   : > { %4759 = vmatprep.mubr.msk.f32.mxu1 %vm996_vm1, %v988_v40  ;;  %5025 = vmatprep.mubr.msk.f32.mxu0 %vm996_vm1, %v960_v12 }
 0x155   : > { %4760 = vmatmul.mubr.msk.f32.gmra.mxu1 %vm996_vm1, %v989_v1  ;;  %v6235_v4 = vpop.f32.mrf.mxu0 }
 0x157   : > { %v6237_v2 = vpop.f32.mrf.mxu0  ;;  %5026 = vmatmul.mubr.msk.f32.gmra.mxu0 %vm996_vm1, %v961_v10 }
 0x158   : > { %5028 = vmatprep.mubr.msk.f32.mxu0 %vm996_vm1, %v962_v16 }
 0x159   : > { %v6245_v3 = vpop.f32.mrf.mxu0 }
 0x15b   : > { %v6247_v7 = vpop.f32.mrf.mxu0  ;;  %5029 = vmatmul.mubr.msk.f32.gmra.mxu0 %vm996_vm1, %v963_v15 }
 0x15c   : > { %5031 = vmatprep.mubr.msk.f32.mxu0 %vm996_vm1, %v964_v21 }
 0x15d   : > { %v6255_v5 = vpop.f32.mrf.mxu0 }
 0x15f   : > { %v6257_v8 = vpop.f32.mrf.mxu0  ;;  %5032 = vmatmul.mubr.msk.f32.gmra.mxu0 %vm996_vm1, %v965_v19 }
 0x160   : > { %5034 = vmatprep.mubr.msk.f32.mxu0 %vm996_vm1, %v966_v25 }
 0x161   : > { %v6265_v9 = vpop.f32.mrf.mxu0 }
 0x163   : > { %v6267_v12 = vpop.f32.mrf.mxu0  ;;  %5035 = vmatmul.mubr.msk.f32.gmra.mxu0 %vm996_vm1, %v967_v24 }
 0x164   : > { %5037 = vmatprep.mubr.msk.f32.mxu0 %vm996_vm1, %v968_v29 }
 0x165   : > { %v6275_v10 = vpop.f32.mrf.mxu0 }
 0x167   : > { %v6277_v13 = vpop.f32.mrf.mxu0  ;;  %5038 = vmatmul.mubr.msk.f32.gmra.mxu0 %vm996_vm1, %v969_v28  ;;  %v6913_v28 = vmax.f32 %v6131_v54, 0.0 }
 0x168   : > { %5040 = vmatprep.mubr.msk.f32.mxu0 %vm996_vm1, %v970_v33 }
 0x169   : > { %v6288_v16 = vpop.f32.mrf.mxu0 }
 0x16b   : > { %v6290_v15 = vpop.f32.mrf.mxu0  ;;  %5041 = vmatmul.mubr.msk.f32.gmra.mxu0 %vm996_vm1, %v971_v32 }
 0x16c   : > { %5043 = vmatprep.mubr.msk.f32.mxu0 %vm996_vm1, %v972_v38 }
 0x16d   : > { %v6298_v17 = vpop.f32.mrf.mxu0 }
 0x16f   : > { %v6300_v18 = vpop.f32.mrf.mxu0  ;;  %5044 = vmatmul.mubr.msk.f32.gmra.mxu0 %vm996_vm1, %v973_v36 }
 0x170   : > { %5046 = vmatprep.mubr.msk.f32.mxu0 %vm996_vm1, %v974_v45 }
 0x171   : > { %v6308_v21 = vpop.f32.mrf.mxu0 }
 0x173   : > { %v6310_v19 = vpop.f32.mrf.mxu0  ;;  %5047 = vmatmul.mubr.msk.f32.gmra.mxu0 %vm996_vm1, %v975_v43 }
 0x174   : > { %5049 = vmatprep.mubr.msk.f32.mxu0 %vm996_vm1, %v976_v49 }
 0x175   : > { %v6318_v22 = vpop.f32.mrf.mxu0 }
 0x177   : > { %v6320_v23 = vpop.f32.mrf.mxu0  ;;  %5050 = vmatmul.mubr.msk.f32.gmra.mxu0 %vm996_vm1, %v977_v48 }
 0x178   : > { %5052 = vmatprep.mubr.msk.f32.mxu0 %vm996_vm1, %v978_v53 }
 0x179   : > { %v6328_v25 = vpop.f32.mrf.mxu0 }
 0x17b   : > { %v6330_v24 = vpop.f32.mrf.mxu0  ;;  %5053 = vmatmul.mubr.msk.f32.gmra.mxu0 %vm996_vm1, %v6912_v26 }
 0x17c   : > { %5055 = vmatprep.mubr.msk.f32.mxu0 %vm996_vm1, %v980_v58 }
 0x17d   : > { %v6338_v27 = vpop.f32.mrf.mxu0 }
 0x17f   : > { %v6340_v29 = vpop.f32.mrf.mxu0  ;;  %5056 = vmatmul.mubr.msk.f32.gmra.mxu0 %vm996_vm1, %v6913_v28 }
 0x180   : > { %5058 = vmatprep.mubr.msk.f32.mxu0 %vm996_vm1, %v982_v0 }
 0x181   : > { %v6348_v30 = vpop.f32.mrf.mxu0 }
 0x183   : > { %v6350_v31 = vpop.f32.mrf.mxu0  ;;  %5059 = vmatmul.mubr.msk.f32.gmra.mxu0 %vm996_vm1, %v983_v61 }
 0x184   : > { %5061 = vmatprep.mubr.msk.f32.mxu0 %vm996_vm1, %v984_v60 }
 0x185   : > { %v6358_v33 = vpop.f32.mrf.mxu0 }
 0x187   : > { %v6360_v32 = vpop.f32.mrf.mxu0  ;;  %5062 = vmatmul.mubr.msk.f32.gmra.mxu0 %vm996_vm1, %v985_v42  ;;  %v2669_v42 = vld [vmem:[%s6895_s6 + $0x8] sm:$0xff] }
 0x188   : > { %5064 = vmatprep.mubr.msk.f32.mxu0 %vm996_vm1, %v986_v57 }
 0x189   : > { %v6368_v34 = vpop.f32.mrf.mxu0 }
 0x18b   : > { %v6370_v35 = vpop.f32.mrf.mxu0  ;;  %5065 = vmatmul.mubr.msk.f32.gmra.mxu0 %vm996_vm1, %v987_v11 }
 0x18c   : > { %5067 = vmatprep.mubr.msk.f32.mxu0 %vm996_vm1, %v988_v40 }
 0x18d   : > { %v6378_v38 = vpop.f32.mrf.mxu0 }
 0x18f   : > { %5068 = vmatmul.mubr.msk.f32.gmra.mxu0 %vm996_vm1, %v989_v1  ;;  %v6383_v36 = vpop.f32.mrf.mxu0 }
 0x191   : > { %v6385_v39 = vpop.f32.mrf.mxu0 }
 0x193   : > { %v6387_v45 = vpop.f32.mrf.mxu0 }
 0x195   : > { %v6391_v50 = vpop.f32.mrf.mxu0 }
 0x197   : > { %v6400_v59 = vpop.f32.mrf.mxu0 }
 0x199   : > { %v4668_v41 = vpop.f32.mrf.mxu1  ;;  %v6409_v57 = vpop.f32.mrf.mxu0 }
 0x19a   : > { %v1646_v43 = vadd.f32 %v6221_v6, %v4668_v41 }
 0x19b   : > { %v1255_v46 = vpop.f32.mrf.mxu1 }
 0x19c   : > { %v1641_v47 = vadd.f32 %v6235_v4, %v1255_v46  ;;  %v1960_v51 = vmax.f32 %v1646_v43, 0.0  ;;  %v6415_v4 = vpop.f32.mrf.mxu0 }
 0x19d   : > { %v4671_v49 = vpop.f32.mrf.mxu1 }
 0x19e   : > { %v1959_v48 = vmax.f32 %v1641_v47, 0.0  ;;  %v1656_v53 = vadd.f32 %v6237_v2, %v4671_v49 }
 0x19f   : > { %v1265_v52 = vpop.f32.mrf.mxu1 }
 0x1a0   : > { %v1651_v54 = vadd.f32 %v6245_v3, %v1265_v52  ;;  %4870 = vmatprep.mubr.msk.f32.mxu1 %vm996_vm1, %v1959_v48  ;;  %v1962_v63 = vmax.f32 %v1656_v53, 0.0 }
 0x1a1   : > { %v4674_v58 = vpop.f32.mrf.mxu1  ;;  %4871 = vmatmul.mubr.msk.f32.vlgmr.msra.gmra.mxu1 %vm996_vm1, %v1960_v51 }
 0x1a2   : > { %v1961_v56 = vmax.f32 %v1651_v54, 0.0  ;;  %5071 = vmatpush3.msra.mxu1 %v2671_v14  ;;  %v1666_v0 = vadd.f32 %v6247_v7, %v4674_v58  ;;  %v6421_v14 = vpop.f32.mrf.mxu0 }
 0x1a3   : > { %v1275_v61 = vpop.f32.mrf.mxu1  ;;  %5072 = vmatprep.subr.mxu1 %v2670_v55 }
 0x1a4   : > { %v1661_v44 = vadd.f32 %v6255_v5, %v1275_v61  ;;  %4873 = vmatprep.mubr.msk.f32.mxu1 %vm996_vm1, %v1961_v56  ;;  %5073 = vmatpush3.msra.mxu1 %v2670_v55  ;;  %v1964_v11 = vmax.f32 %v1666_v0, 0.0  ;;  %v6427_v46 = vpop.f32.mrf.mxu0 }
 0x1a5   : > { %v4677_v60 = vpop.f32.mrf.mxu1  ;;  %4874 = vmatmul.mubr.msk.f32.gmra.mxu1 %vm996_vm1, %v1962_v63  ;;  %5074 = vmatprep.subr.mxu1 %v2669_v42 }
 0x1a6   : > { %v1963_v20 = vmax.f32 %v1661_v44, 0.0  ;;  %v1676_v37 = vadd.f32 %v6257_v8, %v4677_v60  ;;  %5075 = vmatpush3.msra.mxu1 %v2669_v42  ;;  %v6433_v53 = vpop.f32.mrf.mxu0 }
 0x1a7   : > { %v1285_v62 = vpop.f32.mrf.mxu1 }
 0x1a8   : > { %v1671_v40 = vadd.f32 %v6265_v9, %v1285_v62  ;;  %4876 = vmatprep.mubr.msk.f32.mxu1 %vm996_vm1, %v1963_v20  ;;  %v1966_v2 = vmax.f32 %v1676_v37, 0.0  ;;  %v6439_v56 = vpop.f32.mrf.mxu0 }
 0x1a9   : > { %v4680_v1 = vpop.f32.mrf.mxu1  ;;  %4877 = vmatmul.mubr.msk.f32.gmra.mxu1 %vm996_vm1, %v1964_v11 }
 0x1aa   : > { %v1965_v6 = vmax.f32 %v1671_v40, 0.0  ;;  %v1686_v3 = vadd.f32 %v6267_v12, %v4680_v1  ;;  %v6445_v60 = vpop.f32.mrf.mxu0 }
 0x1ab   : > { %v1295_v7 = vpop.f32.mrf.mxu1 }
 0x1ac   : > { %v1681_v5 = vadd.f32 %v6275_v10, %v1295_v7  ;;  %4879 = vmatprep.mubr.msk.f32.mxu1 %vm996_vm1, %v1965_v6  ;;  %v1968_v26 = vmax.f32 %v1686_v3, 0.0  ;;  %v6451_v62 = vpop.f32.mrf.mxu0 }
 0x1ad   : > { %v4683_v8 = vpop.f32.mrf.mxu1  ;;  %4880 = vmatmul.mubr.msk.f32.gmra.mxu1 %vm996_vm1, %v1966_v2 }
 0x1ae   : > { %v1967_v9 = vmax.f32 %v1681_v5, 0.0  ;;  %v1696_v28 = vadd.f32 %v6277_v13, %v4683_v8  ;;  %v6460_v7 = vpop.f32.mrf.mxu0 }
 0x1af   : > { %v1305_v41 = vpop.f32.mrf.mxu1 }
 0x1b0   : > { %v1691_v43 = vadd.f32 %v6288_v16, %v1305_v41  ;;  %4882 = vmatprep.mubr.msk.f32.mxu1 %vm996_vm1, %v1967_v9  ;;  %v1970_v47 = vmax.f32 %v1696_v28, 0.0  ;;  %v6466_v28 = vpop.f32.mrf.mxu0 }
 0x1b1   : > { %v4686_v12 = vpop.f32.mrf.mxu1  ;;  %4883 = vmatmul.mubr.msk.f32.gmra.mxu1 %vm996_vm1, %v1968_v26 }
 0x1b2   : > { %v1969_v10 = vmax.f32 %v1691_v43, 0.0  ;;  %v1706_v49 = vadd.f32 %v6290_v15, %v4686_v12 }
 0x1b3   : > { %v1315_v48 = vpop.f32.mrf.mxu1 }
 0x1b4   : > { %v1701_v51 = vadd.f32 %v6298_v17, %v1315_v48  ;;  %4885 = vmatprep.mubr.msk.f32.mxu1 %vm996_vm1, %v1969_v10  ;;  %v1972_v52 = vmax.f32 %v1706_v49, 0.0 }
 0x1b5   : > { %v4689_v13 = vpop.f32.mrf.mxu1  ;;  %4886 = vmatmul.mubr.msk.f32.gmra.mxu1 %vm996_vm1, %v1970_v47  ;;  %v6472_v47 = vpop.f32.mrf.mxu0 }
 0x1b6   : > { %v1971_v16 = vmax.f32 %v1701_v51, 0.0  ;;  %v1716_v54 = vadd.f32 %v6300_v18, %v4689_v13 }
 0x1b7   : > { %v1325_v55 = vpop.f32.mrf.mxu1 }
 0x1b8   : > { %v1711_v58 = vadd.f32 %v6308_v21, %v1325_v55  ;;  %4888 = vmatprep.mubr.msk.f32.mxu1 %vm996_vm1, %v1971_v16  ;;  %v1974_v63 = vmax.f32 %v1716_v54, 0.0  ;;  %v6478_v16 = vpop.f32.mrf.mxu0 }
 0x1b9   : > { %v4692_v15 = vpop.f32.mrf.mxu1  ;;  %4889 = vmatmul.mubr.msk.f32.gmra.mxu1 %vm996_vm1, %v1972_v52 }
 0x1ba   : > { %v1973_v17 = vmax.f32 %v1711_v58, 0.0  ;;  %v1726_v0 = vadd.f32 %v6310_v19, %v4692_v15  ;;  %v6484_v15 = vpop.f32.mrf.mxu0 }
 0x1bb   : > { %v1335_v61 = vpop.f32.mrf.mxu1 }
 0x1bc   : > { %v1721_v44 = vadd.f32 %v6318_v22, %v1335_v61  ;;  %4891 = vmatprep.mubr.msk.f32.mxu1 %vm996_vm1, %v1973_v17  ;;  %v1976_v42 = vmax.f32 %v1726_v0, 0.0 }
 0x1bd   : > { %v4695_v18 = vpop.f32.mrf.mxu1  ;;  %4892 = vmatmul.mubr.msk.f32.gmra.mxu1 %vm996_vm1, %v1974_v63 }
 0x1be   : > { %v1975_v21 = vmax.f32 %v1721_v44, 0.0  ;;  %v1736_v20 = vadd.f32 %v6320_v23, %v4695_v18  ;;  %v6490_v44 = vpop.f32.mrf.mxu0 }
 0x1bf   : > { %v1345_v11 = vpop.f32.mrf.mxu1 }
 0x1c0   : > { %v1731_v37 = vadd.f32 %v6328_v25, %v1345_v11  ;;  %4894 = vmatprep.mubr.msk.f32.mxu1 %vm996_vm1, %v1975_v21  ;;  %v1978_v40 = vmax.f32 %v1736_v20, 0.0  ;;  %v2668_v25 = vld [vmem:[%s6895_s6] sm:$0xff]  ;;  %v6496_v11 = vpop.f32.mrf.mxu0 }
 0x1c1   : > { %v4698_v19 = vpop.f32.mrf.mxu1  ;;  %4895 = vmatmul.mubr.msk.f32.gmra.mxu1 %vm996_vm1, %v1976_v42  ;;  %5076 = vmatprep.subr.mxu1 %v2668_v25 }
 0x1c2   : > { %v1977_v22 = vmax.f32 %v1731_v37, 0.0  ;;  %v1746_v1 = vadd.f32 %v6330_v24, %v4698_v19  ;;  %5077 = vmatpush3.msra.mxu1 %v2668_v25 }
 0x1c3   : > { %v1355_v6 = vpop.f32.mrf.mxu1 }
 0x1c4   : > { %v1741_v2 = vadd.f32 %v6338_v27, %v1355_v6  ;;  %4897 = vmatprep.mubr.msk.f32.mxu1 %vm996_vm1, %v1977_v22  ;;  %v1980_v5 = vmax.f32 %v1746_v1, 0.0  ;;  %v6502_v1 = vpop.f32.mrf.mxu0 }
 0x1c5   : > { %v4701_v23 = vpop.f32.mrf.mxu1  ;;  %4898 = vmatmul.mubr.msk.f32.gmra.mxu1 %vm996_vm1, %v1978_v40 }
 0x1c6   : > { %v1979_v3 = vmax.f32 %v1741_v2, 0.0  ;;  %v1756_v8 = vadd.f32 %v6340_v29, %v4701_v23 }
 0x1c7   : > { %v1365_v24 = vpop.f32.mrf.mxu1 }
 0x1c8   : > { %v1751_v27 = vadd.f32 %v6348_v30, %v1365_v24  ;;  %4900 = vmatprep.mubr.msk.f32.mxu1 %vm996_vm1, %v1979_v3  ;;  %v1982_v41 = vmax.f32 %v1756_v8, 0.0  ;;  %v1890_v3 = vpop.f32.mrf.mxu0 }
 0x1c9   : > { %v4704_v9 = vpop.f32.mrf.mxu1  ;;  %4901 = vmatmul.mubr.msk.f32.gmra.mxu1 %vm996_vm1, %v1980_v5 }
 0x1ca   : > { %v1981_v26 = vmax.f32 %v1751_v27, 0.0  ;;  %v1766_v43 = vadd.f32 %v6350_v31, %v4704_v9 }
 0x1cb   : > { %v1375_v12 = vpop.f32.mrf.mxu1 }
 0x1cc   : > { %v1761_v10 = vadd.f32 %v6358_v33, %v1375_v12  ;;  %4903 = vmatprep.mubr.msk.f32.mxu1 %vm996_vm1, %v1981_v26  ;;  %v1984_v49 = vmax.f32 %v1766_v43, 0.0 }
 0x1cd   : > { %v4707_v29 = vpop.f32.mrf.mxu1  ;;  %4904 = vmatmul.mubr.msk.f32.gmra.mxu1 %vm996_vm1, %v1982_v41 }
 0x1ce   : > { %v1983_v30 = vmax.f32 %v1761_v10, 0.0  ;;  %v1776_v48 = vadd.f32 %v6360_v32, %v4707_v29 }
 0x1cf   : > { %v1385_v51 = vpop.f32.mrf.mxu1 }
 0x1d0   : > { %v1771_v13 = vadd.f32 %v6368_v34, %v1385_v51  ;;  %4906 = vmatprep.mubr.msk.f32.mxu1 %vm996_vm1, %v1983_v30  ;;  %v1986_v52 = vmax.f32 %v1776_v48, 0.0 }
 0x1d1   : > { %v4710_v31 = vpop.f32.mrf.mxu1  ;;  %4907 = vmatmul.mubr.msk.f32.gmra.mxu1 %vm996_vm1, %v1984_v49 }
 0x1d2   : > { %v1985_v33 = vmax.f32 %v1771_v13, 0.0  ;;  %v1786_v54 = vadd.f32 %v6370_v35, %v4710_v31 }
 0x1d3   : > { %v1395_v55 = vpop.f32.mrf.mxu1 }
 0x1d4   : > { %v1781_v58 = vadd.f32 %v6378_v38, %v1395_v55  ;;  %4909 = vmatprep.mubr.msk.f32.mxu1 %vm996_vm1, %v1985_v33  ;;  %v1988_v17 = vmax.f32 %v1786_v54, 0.0 }
 0x1d5   : > { %v4713_v32 = vpop.f32.mrf.mxu1  ;;  %4910 = vmatmul.mubr.msk.f32.gmra.mxu1 %vm996_vm1, %v1986_v52 }
 0x1d6   : > { %v1987_v34 = vmax.f32 %v1781_v58, 0.0  ;;  %v1796_v63 = vadd.f32 %v6383_v36, %v4713_v32 }
 0x1d7   : > { %v1405_v0 = vpop.f32.mrf.mxu1 }
 0x1d8   : > { %v1791_v61 = vadd.f32 %v6385_v39, %v1405_v0  ;;  %4912 = vmatprep.mubr.msk.f32.mxu1 %vm996_vm1, %v1987_v34  ;;  %v1990_v18 = vmax.f32 %v1796_v63, 0.0 }
 0x1d9   : > { %v4716_v35 = vpop.f32.mrf.mxu1  ;;  %4913 = vmatmul.mubr.msk.f32.gmra.mxu1 %vm996_vm1, %v1988_v17 }
 0x1da   : > { %v1989_v38 = vmax.f32 %v1791_v61, 0.0  ;;  %v1806_v21 = vadd.f32 %v6387_v45, %v4716_v35 }
 0x1db   : > { %v1415_v42 = vpop.f32.mrf.mxu1 }
 0x1dc   : > { %v1801_v20 = vadd.f32 %v6391_v50, %v1415_v42  ;;  %4915 = vmatprep.mubr.msk.f32.mxu1 %vm996_vm1, %v1989_v38  ;;  %v1992_v37 = vmax.f32 %v1806_v21, 0.0 }
 0x1dd   : > { %v4719_v36 = vpop.f32.mrf.mxu1  ;;  %4916 = vmatmul.mubr.msk.f32.gmra.mxu1 %vm996_vm1, %v1990_v18 }
 0x1de   : > { %v1991_v39 = vmax.f32 %v1801_v20, 0.0  ;;  %v1816_v19 = vadd.f32 %v6400_v59, %v4719_v36 }
 0x1df   : > { %v1425_v22 = vpop.f32.mrf.mxu1 }
 0x1e0   : > { %v1811_v40 = vadd.f32 %v6409_v57, %v1425_v22  ;;  %4918 = vmatprep.mubr.msk.f32.mxu1 %vm996_vm1, %v1991_v39  ;;  %v1994_v6 = vmax.f32 %v1816_v19, 0.0 }
 0x1e1   : > { %v4722_v45 = vpop.f32.mrf.mxu1  ;;  %4919 = vmatmul.mubr.msk.f32.gmra.mxu1 %vm996_vm1, %v1992_v37 }
 0x1e2   : > { %v1993_v50 = vmax.f32 %v1811_v40, 0.0  ;;  %v1826_v2 = vadd.f32 %v6415_v4, %v4722_v45 }
 0x1e3   : > { %v1435_v23 = vpop.f32.mrf.mxu1 }
 0x1e4   : > { %v1821_v25 = vadd.f32 %v6421_v14, %v1435_v23  ;;  %4921 = vmatprep.mubr.msk.f32.mxu1 %vm996_vm1, %v1993_v50  ;;  %v1996_v5 = vmax.f32 %v1826_v2, 0.0  ;;  %v4846_v14 = vpop.f32.mrf.mxu0 }
 0x1e5   : > { %v4725_v59 = vpop.f32.mrf.mxu1  ;;  %4922 = vmatmul.mubr.msk.f32.gmra.mxu1 %vm996_vm1, %v1994_v6 }
 0x1e6   : > { %v1995_v57 = vmax.f32 %v1821_v25, 0.0  ;;  %v1836_v8 = vadd.f32 %v6427_v46, %v4725_v59 }
 0x1e7   : > { %v1445_v24 = vpop.f32.mrf.mxu1 }
 0x1e8   : > { %v1831_v27 = vadd.f32 %v6433_v53, %v1445_v24  ;;  %4924 = vmatprep.mubr.msk.f32.mxu1 %vm996_vm1, %v1995_v57  ;;  %v1998_v26 = vmax.f32 %v1836_v8, 0.0  ;;  %v1900_v53 = vpop.f32.mrf.mxu0 }
 0x1e9   : > { %v4728_v9 = vpop.f32.mrf.mxu1  ;;  %4925 = vmatmul.mubr.msk.f32.gmra.mxu1 %vm996_vm1, %v1996_v5 }
 0x1ea   : > { %v1997_v4 = vmax.f32 %v1831_v27, 0.0  ;;  %v1846_v41 = vadd.f32 %v6439_v56, %v4728_v9 }
 0x1eb   : > { %v1455_v43 = vpop.f32.mrf.mxu1 }
 0x1ec   : > { %v1841_v12 = vadd.f32 %v6445_v60, %v1455_v43  ;;  %4927 = vmatprep.mubr.msk.f32.mxu1 %vm996_vm1, %v1997_v4  ;;  %v2000_v29 = vmax.f32 %v1846_v41, 0.0  ;;  %v4849_v60 = vpop.f32.mrf.mxu0 }
 0x1ed   : > { %v4731_v10 = vpop.f32.mrf.mxu1  ;;  %4928 = vmatmul.mubr.msk.f32.gmra.mxu1 %vm996_vm1, %v1998_v26 }
 0x1ee   : > { %v1999_v46 = vmax.f32 %v1841_v12, 0.0  ;;  %v1856_v30 = vadd.f32 %v6451_v62, %v4731_v10 }
 0x1ef   : > { %v1465_v49 = vpop.f32.mrf.mxu1 }
 0x1f0   : > { %v1851_v48 = vadd.f32 %v6460_v7, %v1465_v49  ;;  %4930 = vmatprep.mubr.msk.f32.mxu1 %vm996_vm1, %v1999_v46  ;;  %v2002_v13 = vmax.f32 %v1856_v30, 0.0  ;;  %v1910_v7 = vpop.f32.mrf.mxu0 }
 0x1f1   : > { %v4734_v51 = vpop.f32.mrf.mxu1  ;;  %4931 = vmatmul.mubr.msk.f32.gmra.mxu1 %vm996_vm1, %v2000_v29 }
 0x1f2   : > { %v2001_v56 = vmax.f32 %v1851_v48, 0.0  ;;  %v1866_v31 = vadd.f32 %v6466_v28, %v4734_v51 }
 0x1f3   : > { %v1475_v33 = vpop.f32.mrf.mxu1 }
 0x1f4   : > { %v1861_v52 = vadd.f32 %v6472_v47, %v1475_v33  ;;  %4933 = vmatprep.mubr.msk.f32.mxu1 %vm996_vm1, %v2001_v56  ;;  %v2004_v55 = vmax.f32 %v1866_v31, 0.0  ;;  %v4852_v47 = vpop.f32.mrf.mxu0 }
 0x1f5   : > { %v4737_v54 = vpop.f32.mrf.mxu1  ;;  %4934 = vmatmul.mubr.msk.f32.gmra.mxu1 %vm996_vm1, %v2002_v13 }
 0x1f6   : > { %v2003_v62 = vmax.f32 %v1861_v52, 0.0  ;;  %v1876_v58 = vadd.f32 %v6478_v16, %v4737_v54 }
 0x1f7   : > { %v1485_v32 = vpop.f32.mrf.mxu1 }
 0x1f8   : > { %v1871_v34 = vadd.f32 %v6484_v15, %v1485_v32  ;;  %4936 = vmatprep.mubr.msk.f32.mxu1 %vm996_vm1, %v2003_v62  ;;  %v2006_v63 = vmax.f32 %v1876_v58, 0.0  ;;  %v1920_v15 = vpop.f32.mrf.mxu0 }
 0x1f9   : > { %v4740_v17 = vpop.f32.mrf.mxu1  ;;  %4937 = vmatmul.mubr.msk.f32.gmra.mxu1 %vm996_vm1, %v2004_v55 }
 0x1fa   : > { %v2005_v28 = vmax.f32 %v1871_v34, 0.0  ;;  %v1886_v0 = vadd.f32 %v6490_v44, %v4740_v17  ;;  %v4855_v39 = vpop.f32.mrf.mxu0 }
 0x1fb   : > { %v1495_v61 = vpop.f32.mrf.mxu1 }
 0x1fc   : > { %v1881_v35 = vadd.f32 %v6496_v11, %v1495_v61  ;;  %4939 = vmatprep.mubr.msk.f32.mxu1 %vm996_vm1, %v2005_v28  ;;  %v2008_v18 = vmax.f32 %v1886_v0, 0.0  ;;  %v1930_v50 = vpop.f32.mrf.mxu0 }
 0x1fd   : > { %v4743_v38 = vpop.f32.mrf.mxu1  ;;  %4940 = vmatmul.mubr.msk.f32.gmra.mxu1 %vm996_vm1, %v2006_v63 }
 0x1fe   : > { %v2007_v16 = vmax.f32 %v1881_v35, 0.0  ;;  %v1896_v21 = vadd.f32 %v6502_v1, %v4743_v38  ;;  %v4858_v57 = vpop.f32.mrf.mxu0 }
 0x1ff   : > { %v1505_v42 = vpop.f32.mrf.mxu1 }
 0x200   : > { %v1891_v20 = vadd.f32 %v1890_v3, %v1505_v42  ;;  %4942 = vmatprep.mubr.msk.f32.mxu1 %vm996_vm1, %v2007_v16  ;;  %v2010_v11 = vmax.f32 %v1896_v21, 0.0  ;;  %v1940_v4 = vpop.f32.mrf.mxu0 }
 0x201   : > { %v4746_v36 = vpop.f32.mrf.mxu1  ;;  %4943 = vmatmul.mubr.msk.f32.gmra.mxu1 %vm996_vm1, %v2008_v18 }
 0x202   : > { %v2009_v44 = vmax.f32 %v1891_v20, 0.0  ;;  %v1906_v37 = vadd.f32 %v4846_v14, %v4746_v36  ;;  %v4861_v46 = vpop.f32.mrf.mxu0 }
 0x203   : > { %v1515_v19 = vpop.f32.mrf.mxu1 }
 0x204   : > { %v1901_v22 = vadd.f32 %v1900_v53, %v1515_v19  ;;  %4945 = vmatprep.mubr.msk.f32.mxu1 %vm996_vm1, %v2009_v44  ;;  %v2012_v1 = vmax.f32 %v1906_v37, 0.0  ;;  %v1950_v56 = vpop.f32.mrf.mxu0 }
 0x205   : > { %v4749_v40 = vpop.f32.mrf.mxu1  ;;  %4946 = vmatmul.mubr.msk.f32.gmra.mxu1 %vm996_vm1, %v2010_v11 }
 0x206   : > { %v2011_v45 = vmax.f32 %v1901_v22, 0.0  ;;  %v1916_v6 = vadd.f32 %v4849_v60, %v4749_v40 }
 0x207   : > { %v1525_v2 = vpop.f32.mrf.mxu1 }
 0x208   : > { %v1911_v23 = vadd.f32 %v1910_v7, %v1525_v2  ;;  %4948 = vmatprep.mubr.msk.f32.mxu1 %vm996_vm1, %v2011_v45  ;;  %v2014_v3 = vmax.f32 %v1916_v6, 0.0 }
 0x209   : > { %v4752_v25 = vpop.f32.mrf.mxu1  ;;  %4949 = vmatmul.mubr.msk.f32.gmra.mxu1 %vm996_vm1, %v2012_v1 }
 0x20a   : > { %v2013_v59 = vmax.f32 %v1911_v23, 0.0  ;;  %v1926_v5 = vadd.f32 %v4852_v47, %v4752_v25 }
 0x20b   : > { %v1535_v8 = vpop.f32.mrf.mxu1 }
 0x20c   : > { %v1921_v24 = vadd.f32 %v1920_v15, %v1535_v8  ;;  %4951 = vmatprep.mubr.msk.f32.mxu1 %vm996_vm1, %v2013_v59  ;;  %v2016_v14 = vmax.f32 %v1926_v5, 0.0 }
 0x20d   : > { %v4755_v27 = vpop.f32.mrf.mxu1  ;;  %4952 = vmatmul.mubr.msk.f32.gmra.mxu1 %vm996_vm1, %v2014_v3 }
 0x20e   : > { %v2015_v9 = vmax.f32 %v1921_v24, 0.0  ;;  %v1936_v26 = vadd.f32 %v4855_v39, %v4755_v27 }
 0x20f   : > { %v1545_v41 = vpop.f32.mrf.mxu1 }
 0x210   : > { %v1931_v43 = vadd.f32 %v1930_v50, %v1545_v41  ;;  %4954 = vmatprep.mubr.msk.f32.mxu1 %vm996_vm1, %v2015_v9  ;;  %v2018_v53 = vmax.f32 %v1936_v26, 0.0 }
 0x211   : > { %v4758_v12 = vpop.f32.mrf.mxu1  ;;  %4955 = vmatmul.mubr.msk.f32.gmra.mxu1 %vm996_vm1, %v2016_v14 }
 0x212   : > { %v2017_v10 = vmax.f32 %v1931_v43, 0.0  ;;  %v1946_v29 = vadd.f32 %v4858_v57, %v4758_v12 }
 0x213   : > { %v1555_v30 = vpop.f32.mrf.mxu1 }
 0x214   : > { %v1941_v49 = vadd.f32 %v1940_v4, %v1555_v30  ;;  %4957 = vmatprep.mubr.msk.f32.mxu1 %vm996_vm1, %v2017_v10  ;;  %v2020_v60 = vmax.f32 %v1946_v29, 0.0 }
 0x215   : > { %v4761_v48 = vpop.f32.mrf.mxu1  ;;  %4958 = vmatmul.mubr.msk.f32.gmra.mxu1 %vm996_vm1, %v2018_v53 }
 0x216   : > { %v2019_v51 = vmax.f32 %v1941_v49, 0.0  ;;  %v1956_v13 = vadd.f32 %v4861_v46, %v4761_v48 }
 0x217   : > { %v1565_v31 = vpop.f32.mrf.mxu1 }
 0x218   : > { %v1951_v33 = vadd.f32 %v1950_v56, %v1565_v31  ;;  %4960 = vmatprep.mubr.msk.f32.mxu1 %vm996_vm1, %v2019_v51  ;;  %v2022_v54 = vmax.f32 %v1956_v13, 0.0 }
 0x219   : > { %4961 = vmatmul.mubr.msk.f32.gmra.mxu1 %vm996_vm1, %v2020_v60 }
 0x21a   : > { %v2021_v52 = vmax.f32 %v1951_v33, 0.0 }
 0x21c   : > { %4963 = vmatprep.mubr.msk.f32.mxu1 %vm996_vm1, %v2021_v52 }
 0x21d   : > { %4964 = vmatmul.mubr.msk.f32.gmra.mxu1 %vm996_vm1, %v2022_v54 }
 0x261   : > { %v4872_v62 = vpop.f32.mrf.mxu1 }
 0x262   : > { %v2605_v58 = vmax.f32 %v4872_v62, 0.0 }
 0x263   : > { %v2285_v7 = vpop.f32.mrf.mxu1 }
 0x264   : > { %v2604_v55 = vmax.f32 %v2285_v7, 0.0 }
 0x265   : > { %v4875_v32 = vpop.f32.mrf.mxu1 }
 0x266   : > { %5078 = vmatprep.mubr.msk.f32.mxu1 %vm996_vm1, %v2604_v55  ;;  %v2607_v28 = vmax.f32 %v4875_v32, 0.0 }
 0x267   : > { %v2295_v34 = vpop.f32.mrf.mxu1  ;;  %5079 = vmatmul.mubr.msk.f32.vlgmr.msra.gmra.mxu1 %vm996_vm1, %v2605_v58 }
 0x268   : > { %v2606_v17 = vmax.f32 %v2295_v34, 0.0 }
 0x269   : > { %v4878_v47 = vpop.f32.mrf.mxu1 }
 0x26a   : > { %5081 = vmatprep.mubr.msk.f32.mxu1 %vm996_vm1, %v2606_v17  ;;  %v2609_v61 = vmax.f32 %v4878_v47, 0.0 }
 0x26b   : > { %v2305_v63 = vpop.f32.mrf.mxu1  ;;  %5082 = vmatmul.mubr.msk.f32.gmra.mxu1 %vm996_vm1, %v2607_v28  ;;  %v6583_v28 = vpop.f32.mrf.mxu0 }
 0x26c   : > { %v2608_v0 = vmax.f32 %v2305_v63, 0.0 }
 0x26d   : > { %v4881_v35 = vpop.f32.mrf.mxu1 }
 0x26e   : > { %5084 = vmatprep.mubr.msk.f32.mxu1 %vm996_vm1, %v2608_v0  ;;  %v2611_v15 = vmax.f32 %v4881_v35, 0.0  ;;  %v6587_v35 = vpop.f32.mrf.mxu0 }
 0x26f   : > { %v2315_v38 = vpop.f32.mrf.mxu1  ;;  %5085 = vmatmul.mubr.msk.f32.gmra.mxu1 %vm996_vm1, %v2609_v61 }
 0x270   : > { %v2610_v16 = vmax.f32 %v2315_v38, 0.0 }
 0x271   : > { %v4884_v18 = vpop.f32.mrf.mxu1 }
 0x272   : > { %5087 = vmatprep.mubr.msk.f32.mxu1 %vm996_vm1, %v2610_v16  ;;  %v2613_v20 = vmax.f32 %v4884_v18, 0.0 }
 0x273   : > { %v2325_v21 = vpop.f32.mrf.mxu1  ;;  %5088 = vmatmul.mubr.msk.f32.gmra.mxu1 %vm996_vm1, %v2611_v15 }
 0x274   : > { %v2612_v42 = vmax.f32 %v2325_v21, 0.0  ;;  %v6591_v21 = vpop.f32.mrf.mxu0 }
 0x275   : > { %v4887_v36 = vpop.f32.mrf.mxu1 }
 0x276   : > { %5090 = vmatprep.mubr.msk.f32.mxu1 %vm996_vm1, %v2612_v42  ;;  %v2615_v11 = vmax.f32 %v4887_v36, 0.0 }
 0x277   : > { %v2335_v44 = vpop.f32.mrf.mxu1  ;;  %5091 = vmatmul.mubr.msk.f32.gmra.mxu1 %vm996_vm1, %v2613_v20 }
 0x278   : > { %v2614_v39 = vmax.f32 %v2335_v44, 0.0 }
 0x279   : > { %v4890_v37 = vpop.f32.mrf.mxu1 }
 0x27a   : > { %5093 = vmatprep.mubr.msk.f32.mxu1 %vm996_vm1, %v2614_v39  ;;  %v2617_v40 = vmax.f32 %v4890_v37, 0.0  ;;  %v6595_v39 = vpop.f32.mrf.mxu0 }
 0x27b   : > { %v2345_v19 = vpop.f32.mrf.mxu1  ;;  %5094 = vmatmul.mubr.msk.f32.gmra.mxu1 %vm996_vm1, %v2615_v11 }
 0x27c   : > { %v2616_v22 = vmax.f32 %v2345_v19, 0.0 }
 0x27d   : > { %v4893_v45 = vpop.f32.mrf.mxu1 }
 0x27e   : > { %5096 = vmatprep.mubr.msk.f32.mxu1 %vm996_vm1, %v2616_v22  ;;  %v2619_v6 = vmax.f32 %v4893_v45, 0.0 }
 0x27f   : > { %v2355_v50 = vpop.f32.mrf.mxu1  ;;  %5097 = vmatmul.mubr.msk.f32.gmra.mxu1 %vm996_vm1, %v2617_v40  ;;  %v6599_v40 = vpop.f32.mrf.mxu0 }
 0x280   : > { %v2618_v1 = vmax.f32 %v2355_v50, 0.0 }
 0x281   : > { %v4896_v2 = vpop.f32.mrf.mxu1 }
 0x282   : > { %5099 = vmatprep.mubr.msk.f32.mxu1 %vm996_vm1, %v2618_v1  ;;  %v2621_v59 = vmax.f32 %v4896_v2, 0.0  ;;  %v6603_v2 = vpop.f32.mrf.mxu0 }
 0x283   : > { %v2365_v23 = vpop.f32.mrf.mxu1  ;;  %5100 = vmatmul.mubr.msk.f32.gmra.mxu1 %vm996_vm1, %v2619_v6 }
 0x284   : > { %v2620_v25 = vmax.f32 %v2365_v23, 0.0 }
 0x285   : > { %v4899_v57 = vpop.f32.mrf.mxu1 }
 0x286   : > { %5102 = vmatprep.mubr.msk.f32.mxu1 %vm996_vm1, %v2620_v25  ;;  %v2623_v8 = vmax.f32 %v4899_v57, 0.0 }
 0x287   : > { %v2375_v3 = vpop.f32.mrf.mxu1  ;;  %5103 = vmatmul.mubr.msk.f32.gmra.mxu1 %vm996_vm1, %v2621_v59 }
 0x288   : > { %v2622_v5 = vmax.f32 %v2375_v3, 0.0  ;;  %v6607_v3 = vpop.f32.mrf.mxu0 }
 0x289   : > { %v4902_v24 = vpop.f32.mrf.mxu1 }
 0x28a   : > { %5105 = vmatprep.mubr.msk.f32.mxu1 %vm996_vm1, %v2622_v5  ;;  %v2625_v4 = vmax.f32 %v4902_v24, 0.0 }
 0x28b   : > { %v2385_v27 = vpop.f32.mrf.mxu1  ;;  %5106 = vmatmul.mubr.msk.f32.gmra.mxu1 %vm996_vm1, %v2623_v8 }
 0x28c   : > { %v2624_v9 = vmax.f32 %v2385_v27, 0.0 }
 0x28d   : > { %v4905_v14 = vpop.f32.mrf.mxu1 }
 0x28e   : > { %5108 = vmatprep.mubr.msk.f32.mxu1 %vm996_vm1, %v2624_v9  ;;  %v2627_v43 = vmax.f32 %v4905_v14, 0.0  ;;  %v6611_v9 = vpop.f32.mrf.mxu0 }
 0x28f   : > { %v2395_v26 = vpop.f32.mrf.mxu1  ;;  %5109 = vmatmul.mubr.msk.f32.gmra.mxu1 %vm996_vm1, %v2625_v4 }
 0x290   : > { %v2626_v41 = vmax.f32 %v2395_v26, 0.0 }
 0x291   : > { %v4908_v12 = vpop.f32.mrf.mxu1 }
 0x292   : > { %5111 = vmatprep.mubr.msk.f32.mxu1 %vm996_vm1, %v2626_v41  ;;  %v2629_v53 = vmax.f32 %v4908_v12, 0.0 }
 0x293   : > { %v2405_v10 = vpop.f32.mrf.mxu1  ;;  %5112 = vmatmul.mubr.msk.f32.gmra.mxu1 %vm996_vm1, %v2627_v43  ;;  %v6615_v43 = vpop.f32.mrf.mxu0 }
 0x294   : > { %v2628_v46 = vmax.f32 %v2405_v10, 0.0 }
 0x295   : > { %v4911_v29 = vpop.f32.mrf.mxu1 }
 0x296   : > { %5114 = vmatprep.mubr.msk.f32.mxu1 %vm996_vm1, %v2628_v46  ;;  %v2631_v48 = vmax.f32 %v4911_v29, 0.0  ;;  %v6619_v29 = vpop.f32.mrf.mxu0 }
 0x297   : > { %v2415_v30 = vpop.f32.mrf.mxu1  ;;  %5115 = vmatmul.mubr.msk.f32.gmra.mxu1 %vm996_vm1, %v2629_v53 }
 0x298   : > { %v2630_v49 = vmax.f32 %v2415_v30, 0.0 }
 0x299   : > { %v4914_v51 = vpop.f32.mrf.mxu1 }
 0x29a   : > { %5117 = vmatprep.mubr.msk.f32.mxu1 %vm996_vm1, %v2630_v49  ;;  %v2633_v13 = vmax.f32 %v4914_v51, 0.0 }
 0x29b   : > { %v2425_v56 = vpop.f32.mrf.mxu1  ;;  %5118 = vmatmul.mubr.msk.f32.gmra.mxu1 %vm996_vm1, %v2631_v48 }
 0x29c   : > { %v2632_v60 = vmax.f32 %v2425_v56, 0.0  ;;  %v6623_v56 = vpop.f32.mrf.mxu0 }
 0x29d   : > { %v4917_v31 = vpop.f32.mrf.mxu1 }
 0x29e   : > { %5120 = vmatprep.mubr.msk.f32.mxu1 %vm996_vm1, %v2632_v60  ;;  %v2635_v54 = vmax.f32 %v4917_v31, 0.0 }
 0x29f   : > { %v2435_v33 = vpop.f32.mrf.mxu1  ;;  %5121 = vmatmul.mubr.msk.f32.gmra.mxu1 %vm996_vm1, %v2633_v13 }
 0x2a0   : > { %v2634_v52 = vmax.f32 %v2435_v33, 0.0 }
 0x2a1   : > { %v4920_v62 = vpop.f32.mrf.mxu1 }
 0x2a2   : > { %5123 = vmatprep.mubr.msk.f32.mxu1 %vm996_vm1, %v2634_v52  ;;  %v2637_v58 = vmax.f32 %v4920_v62, 0.0  ;;  %v6627_v52 = vpop.f32.mrf.mxu0 }
 0x2a3   : > { %v2445_v7 = vpop.f32.mrf.mxu1  ;;  %5124 = vmatmul.mubr.msk.f32.gmra.mxu1 %vm996_vm1, %v2635_v54 }
 0x2a4   : > { %v2636_v55 = vmax.f32 %v2445_v7, 0.0 }
 0x2a5   : > { %v4923_v32 = vpop.f32.mrf.mxu1 }
 0x2a6   : > { %5126 = vmatprep.mubr.msk.f32.mxu1 %vm996_vm1, %v2636_v55  ;;  %v2639_v47 = vmax.f32 %v4923_v32, 0.0 }
 0x2a7   : > { %v2455_v34 = vpop.f32.mrf.mxu1  ;;  %5127 = vmatmul.mubr.msk.f32.gmra.mxu1 %vm996_vm1, %v2637_v58  ;;  %v6631_v58 = vpop.f32.mrf.mxu0 }
 0x2a8   : > { %v2638_v17 = vmax.f32 %v2455_v34, 0.0 }
 0x2a9   : > { %v4926_v63 = vpop.f32.mrf.mxu1 }
 0x2aa   : > { %5129 = vmatprep.mubr.msk.f32.mxu1 %vm996_vm1, %v2638_v17  ;;  %v2641_v38 = vmax.f32 %v4926_v63, 0.0  ;;  %v6635_v63 = vpop.f32.mrf.mxu0 }
 0x2ab   : > { %v2465_v0 = vpop.f32.mrf.mxu1  ;;  %5130 = vmatmul.mubr.msk.f32.gmra.mxu1 %vm996_vm1, %v2639_v47 }
 0x2ac   : > { %v2640_v61 = vmax.f32 %v2465_v0, 0.0 }
 0x2ad   : > { %v4929_v16 = vpop.f32.mrf.mxu1 }
 0x2ae   : > { %5132 = vmatprep.mubr.msk.f32.mxu1 %vm996_vm1, %v2640_v61  ;;  %v2643_v42 = vmax.f32 %v4929_v16, 0.0 }
 0x2af   : > { %v2475_v15 = vpop.f32.mrf.mxu1  ;;  %5133 = vmatmul.mubr.msk.f32.gmra.mxu1 %vm996_vm1, %v2641_v38 }
 0x2b0   : > { %v2642_v18 = vmax.f32 %v2475_v15, 0.0  ;;  %v6639_v15 = vpop.f32.mrf.mxu0 }
 0x2b1   : > { %v4932_v20 = vpop.f32.mrf.mxu1 }
 0x2b2   : > { %5135 = vmatprep.mubr.msk.f32.mxu1 %vm996_vm1, %v2642_v18  ;;  %v2645_v11 = vmax.f32 %v4932_v20, 0.0 }
 0x2b3   : > { %v2485_v36 = vpop.f32.mrf.mxu1  ;;  %5136 = vmatmul.mubr.msk.f32.gmra.mxu1 %vm996_vm1, %v2643_v42  ;;  %v6643_v42 = vpop.f32.mrf.mxu0 }
 0x2b4   : > { %v2644_v44 = vmax.f32 %v2485_v36, 0.0 }
 0x2b5   : > { %v4935_v37 = vpop.f32.mrf.mxu1  ;;  %v6645_v20 = vpop.f32.mrf.mxu0 }
 0x2b6   : > { %5138 = vmatprep.mubr.msk.f32.mxu1 %vm996_vm1, %v2644_v44  ;;  %v2647_v45 = vmax.f32 %v4935_v37, 0.0 }
 0x2b7   : > { %v2495_v19 = vpop.f32.mrf.mxu1  ;;  %5139 = vmatmul.mubr.msk.f32.gmra.mxu1 %vm996_vm1, %v2645_v11  ;;  %v6647_v36 = vpop.f32.mrf.mxu0 }
 0x2b8   : > { %v2646_v22 = vmax.f32 %v2495_v19, 0.0 }
 0x2b9   : > { %v4938_v50 = vpop.f32.mrf.mxu1  ;;  %v6649_v44 = vpop.f32.mrf.mxu0 }
 0x2ba   : > { %5141 = vmatprep.mubr.msk.f32.mxu1 %vm996_vm1, %v2646_v22  ;;  %v2649_v23 = vmax.f32 %v4938_v50, 0.0 }
 0x2bb   : > { %v2505_v1 = vpop.f32.mrf.mxu1  ;;  %5142 = vmatmul.mubr.msk.f32.gmra.mxu1 %vm996_vm1, %v2647_v45  ;;  %v6651_v11 = vpop.f32.mrf.mxu0 }
 0x2bc   : > { %v2648_v6 = vmax.f32 %v2505_v1, 0.0 }
 0x2bd   : > { %v4941_v25 = vpop.f32.mrf.mxu1  ;;  %v6653_v37 = vpop.f32.mrf.mxu0 }
 0x2be   : > { %5144 = vmatprep.mubr.msk.f32.mxu1 %vm996_vm1, %v2648_v6  ;;  %v2651_v5 = vmax.f32 %v4941_v25, 0.0 }
 0x2bf   : > { %v2515_v59 = vpop.f32.mrf.mxu1  ;;  %5145 = vmatmul.mubr.msk.f32.gmra.mxu1 %vm996_vm1, %v2649_v23  ;;  %v6655_v19 = vpop.f32.mrf.mxu0 }
 0x2c0   : > { %v2650_v57 = vmax.f32 %v2515_v59, 0.0 }
 0x2c1   : > { %v4944_v8 = vpop.f32.mrf.mxu1  ;;  %v6657_v22 = vpop.f32.mrf.mxu0 }
 0x2c2   : > { %5147 = vmatprep.mubr.msk.f32.mxu1 %vm996_vm1, %v2650_v57  ;;  %v2653_v4 = vmax.f32 %v4944_v8, 0.0 }
 0x2c3   : > { %v2525_v24 = vpop.f32.mrf.mxu1  ;;  %5148 = vmatmul.mubr.msk.f32.gmra.mxu1 %vm996_vm1, %v2651_v5  ;;  %v6659_v45 = vpop.f32.mrf.mxu0 }
 0x2c4   : > { %v2652_v27 = vmax.f32 %v2525_v24, 0.0 }
 0x2c5   : > { %v4947_v14 = vpop.f32.mrf.mxu1  ;;  %v6661_v50 = vpop.f32.mrf.mxu0 }
 0x2c6   : > { %5150 = vmatprep.mubr.msk.f32.mxu1 %vm996_vm1, %v2652_v27  ;;  %v2655_v12 = vmax.f32 %v4947_v14, 0.0 }
 0x2c7   : > { %v2535_v26 = vpop.f32.mrf.mxu1  ;;  %5151 = vmatmul.mubr.msk.f32.gmra.mxu1 %vm996_vm1, %v2653_v4  ;;  %v6663_v1 = vpop.f32.mrf.mxu0 }
 0x2c8   : > { %v2654_v41 = vmax.f32 %v2535_v26, 0.0 }
 0x2c9   : > { %v4950_v10 = vpop.f32.mrf.mxu1  ;;  %v6665_v6 = vpop.f32.mrf.mxu0 }
 0x2ca   : > { %5153 = vmatprep.mubr.msk.f32.mxu1 %vm996_vm1, %v2654_v41  ;;  %v2657_v30 = vmax.f32 %v4950_v10, 0.0 }
 0x2cb   : > { %v2545_v46 = vpop.f32.mrf.mxu1  ;;  %5154 = vmatmul.mubr.msk.f32.gmra.mxu1 %vm996_vm1, %v2655_v12  ;;  %v6667_v23 = vpop.f32.mrf.mxu0 }
 0x2cc   : > { %v2656_v53 = vmax.f32 %v2545_v46, 0.0 }
 0x2cd   : > { %v4953_v49 = vpop.f32.mrf.mxu1  ;;  %v6669_v25 = vpop.f32.mrf.mxu0 }
 0x2ce   : > { %5156 = vmatprep.mubr.msk.f32.mxu1 %vm996_vm1, %v2656_v53  ;;  %v2659_v60 = vmax.f32 %v4953_v49, 0.0 }
 0x2cf   : > { %v2555_v48 = vpop.f32.mrf.mxu1  ;;  %5157 = vmatmul.mubr.msk.f32.gmra.mxu1 %vm996_vm1, %v2657_v30  ;;  %v6671_v59 = vpop.f32.mrf.mxu0 }
 0x2d0   : > { %v2658_v51 = vmax.f32 %v2555_v48, 0.0 }
 0x2d1   : > { %v4956_v13 = vpop.f32.mrf.mxu1  ;;  %v6673_v57 = vpop.f32.mrf.mxu0 }
 0x2d2   : > { %5159 = vmatprep.mubr.msk.f32.mxu1 %vm996_vm1, %v2658_v51  ;;  %v2661_v54 = vmax.f32 %v4956_v13, 0.0 }
 0x2d3   : > { %v2565_v31 = vpop.f32.mrf.mxu1  ;;  %5160 = vmatmul.mubr.msk.f32.gmra.mxu1 %vm996_vm1, %v2659_v60  ;;  %v6675_v5 = vpop.f32.mrf.mxu0 }
 0x2d4   : > { %v2660_v33 = vmax.f32 %v2565_v31, 0.0 }
 0x2d5   : > { %v4959_v62 = vpop.f32.mrf.mxu1  ;;  %v6685_v27 = vpop.f32.mrf.mxu0 }
 0x2d6   : > { %5162 = vmatprep.mubr.msk.f32.mxu1 %vm996_vm1, %v2660_v33  ;;  %v2663_v32 = vmax.f32 %v4959_v62, 0.0 }
 0x2d7   : > { %v2575_v7 = vpop.f32.mrf.mxu1  ;;  %5163 = vmatmul.mubr.msk.f32.gmra.mxu1 %vm996_vm1, %v2661_v54  ;;  %v6693_v12 = vpop.f32.mrf.mxu0 }
 0x2d8   : > { %v2662_v55 = vmax.f32 %v2575_v7, 0.0 }
 0x2d9   : > { %v4962_v34 = vpop.f32.mrf.mxu1  ;;  %v6701_v53 = vpop.f32.mrf.mxu0 }
 0x2da   : > { %5165 = vmatprep.mubr.msk.f32.mxu1 %vm996_vm1, %v2662_v55  ;;  %v2665_v0 = vmax.f32 %v4962_v34, 0.0 }
 0x2db   : > { %v2585_v17 = vpop.f32.mrf.mxu1  ;;  %5166 = vmatmul.mubr.msk.f32.gmra.mxu1 %vm996_vm1, %v2663_v32  ;;  %v6709_v48 = vpop.f32.mrf.mxu0 }
 0x2dc   : > { %v2664_v47 = vmax.f32 %v2585_v17, 0.0 }
 0x2dd   : > { %v4965_v61 = vpop.f32.mrf.mxu1  ;;  %v6717_v13 = vpop.f32.mrf.mxu0 }
 0x2de   : > { %5168 = vmatprep.mubr.msk.f32.mxu1 %vm996_vm1, %v2664_v47  ;;  %v2667_v18 = vmax.f32 %v4965_v61, 0.0 }
 0x2df   : > { %v2595_v38 = vpop.f32.mrf.mxu1  ;;  %5169 = vmatmul.mubr.msk.f32.gmra.mxu1 %vm996_vm1, %v2665_v0  ;;  %v6725_v54 = vpop.f32.mrf.mxu0 }
 0x2e0   : > { %v2666_v16 = vmax.f32 %v2595_v38, 0.0 }
 0x2e1   : > { %v6733_v55 = vpop.f32.mrf.mxu0 }
 0x2e2   : > { %5171 = vmatprep.mubr.msk.f32.mxu1 %vm996_vm1, %v2666_v16 }
 0x2e3   : > { %5172 = vmatmul.mubr.msk.f32.gmra.mxu1 %vm996_vm1, %v2667_v18  ;;  %v6741_v17 = vpop.f32.mrf.mxu0 }
 0x2e5   : > { %v6749_v61 = vpop.f32.mrf.mxu0 }
 0x327   : > { %v5080_v8 = vpop.f32.mrf.mxu1 }
 0x328   : > { %v3325_v24 = vadd.f32 %v5080_v8, %v6583_v28 }
 0x329   : > { %v3319_v4 = vpop.f32.mrf.mxu1 }
 0x32a   : > { %3640 = vst.msk [vmem:[%s6682_s9 + $0x8] sm:$0xff] %vm3638_vm2, %v3325_v24  ;;  %v3320_v14 = vadd.f32 %v3319_v4, %v6587_v35 }
 0x32b   : > { %v5083_v26 = vpop.f32.mrf.mxu1 }
 0x32c   : > { %3639 = vst.msk [vmem:[%s6682_s9] sm:$0xff] %vm3638_vm2, %v3320_v14  ;;  %v3335_v41 = vadd.f32 %v5083_v26, %v6591_v21 }
 0x32d   : > { %v3329_v10 = vpop.f32.mrf.mxu1 }
 0x32e   : > { %3642 = vst.msk [vmem:[%s6682_s9 + $0x18] sm:$0xff] %vm3638_vm2, %v3335_v41  ;;  %v3330_v28 = vadd.f32 %v3329_v10, %v6595_v39 }
 0x32f   : > { %v5086_v46 = vpop.f32.mrf.mxu1 }
 0x330   : > { %3641 = vst.msk [vmem:[%s6682_s9 + $0x10] sm:$0xff] %vm3638_vm2, %v3330_v28  ;;  %v3345_v35 = vadd.f32 %v5086_v46, %v6599_v40 }
 0x331   : > { %v3339_v30 = vpop.f32.mrf.mxu1 }
 0x332   : > { %3644 = vst.msk [vmem:[%s6682_s9 + $0x28] sm:$0xff] %vm3638_vm2, %v3345_v35  ;;  %v3340_v21 = vadd.f32 %v3339_v30, %v6603_v2 }
 0x333   : > { %v5089_v49 = vpop.f32.mrf.mxu1 }
 0x334   : > { %3643 = vst.msk [vmem:[%s6682_s9 + $0x20] sm:$0xff] %vm3638_vm2, %v3340_v21  ;;  %v3355_v39 = vadd.f32 %v5089_v49, %v6607_v3 }
 0x335   : > { %v3349_v51 = vpop.f32.mrf.mxu1 }
 0x336   : > { %3646 = vst.msk [vmem:[%s6682_s9 + $0x38] sm:$0xff] %vm3638_vm2, %v3355_v39  ;;  %v3350_v40 = vadd.f32 %v3349_v51, %v6611_v9 }
 0x337   : > { %v5092_v60 = vpop.f32.mrf.mxu1 }
 0x338   : > { %3645 = vst.msk [vmem:[%s6682_s9 + $0x30] sm:$0xff] %vm3638_vm2, %v3350_v40  ;;  %v3365_v2 = vadd.f32 %v5092_v60, %v6615_v43 }
 0x339   : > { %v3359_v31 = vpop.f32.mrf.mxu1 }
 0x33a   : > { %3648 = vst.msk [vmem:[%s6682_s9 + $0x48] sm:$0xff] %vm3638_vm2, %v3365_v2  ;;  %v3360_v3 = vadd.f32 %v3359_v31, %v6619_v29 }
 0x33b   : > { %v5095_v33 = vpop.f32.mrf.mxu1 }
 0x33c   : > { %3647 = vst.msk [vmem:[%s6682_s9 + $0x40] sm:$0xff] %vm3638_vm2, %v3360_v3  ;;  %v3375_v9 = vadd.f32 %v5095_v33, %v6623_v56 }
 0x33d   : > { %v3369_v62 = vpop.f32.mrf.mxu1 }
 0x33e   : > { %3650 = vst.msk [vmem:[%s6682_s9 + $0x58] sm:$0xff] %vm3638_vm2, %v3375_v9  ;;  %v3370_v43 = vadd.f32 %v3369_v62, %v6627_v52 }
 0x33f   : > { %v5098_v7 = vpop.f32.mrf.mxu1 }
 0x340   : > { %3649 = vst.msk [vmem:[%s6682_s9 + $0x50] sm:$0xff] %vm3638_vm2, %v3370_v43  ;;  %v3385_v29 = vadd.f32 %v5098_v7, %v6631_v58 }
 0x341   : > { %v3379_v32 = vpop.f32.mrf.mxu1 }
 0x342   : > { %3652 = vst.msk [vmem:[%s6682_s9 + $0x68] sm:$0xff] %vm3638_vm2, %v3385_v29  ;;  %v3380_v56 = vadd.f32 %v3379_v32, %v6635_v63 }
 0x343   : > { %v5101_v34 = vpop.f32.mrf.mxu1 }
 0x344   : > { %3651 = vst.msk [vmem:[%s6682_s9 + $0x60] sm:$0xff] %vm3638_vm2, %v3380_v56  ;;  %v3395_v52 = vadd.f32 %v5101_v34, %v6639_v15 }
 0x345   : > { %v3389_v47 = vpop.f32.mrf.mxu1 }
 0x346   : > { %3654 = vst.msk [vmem:[%s6682_s9 + $0x78] sm:$0xff] %vm3638_vm2, %v3395_v52  ;;  %v3390_v58 = vadd.f32 %v3389_v47, %v6643_v42  ;;  %v6757_v42 = vpop.f32.mrf.mxu0 }
 0x347   : > { %v5104_v0 = vpop.f32.mrf.mxu1 }
 0x348   : > { %3653 = vst.msk [vmem:[%s6682_s9 + $0x70] sm:$0xff] %vm3638_vm2, %v3390_v58  ;;  %v3405_v63 = vadd.f32 %v5104_v0, %v6645_v20  ;;  %v6765_v4 = vpop.f32.mrf.mxu0 }
 0x349   : > { %v3399_v38 = vpop.f32.mrf.mxu1 }
 0x34a   : > { %3656 = vst.msk [vmem:[%s6682_s9 + $0x88] sm:$0xff] %vm3638_vm2, %v3405_v63  ;;  %v3400_v16 = vadd.f32 %v3399_v38, %v6647_v36  ;;  %v6773_v41 = vpop.f32.mrf.mxu0 }
 0x34b   : > { %v5107_v15 = vpop.f32.mrf.mxu1 }
 0x34c   : > { %3655 = vst.msk [vmem:[%s6682_s9 + $0x80] sm:$0xff] %vm3638_vm2, %v3400_v16  ;;  %v3415_v18 = vadd.f32 %v5107_v15, %v6649_v44  ;;  %v6781_v46 = vpop.f32.mrf.mxu0 }
 0x34d   : > { %v3409_v8 = vpop.f32.mrf.mxu1 }
 0x34e   : > { %3658 = vst.msk [vmem:[%s6682_s9 + $0x98] sm:$0xff] %vm3638_vm2, %v3415_v18  ;;  %v3410_v20 = vadd.f32 %v3409_v8, %v6651_v11  ;;  %v6789_v21 = vpop.f32.mrf.mxu0 }
 0x34f   : > { %v5110_v24 = vpop.f32.mrf.mxu1 }
 0x350   : > { %3657 = vst.msk [vmem:[%s6682_s9 + $0x90] sm:$0xff] %vm3638_vm2, %v3410_v20  ;;  %v3425_v36 = vadd.f32 %v5110_v24, %v6653_v37  ;;  %v5045_v51 = vpop.f32.mrf.mxu0 }
 0x351   : > { %v3419_v14 = vpop.f32.mrf.mxu1 }
 0x352   : > { %3660 = vst.msk [vmem:[%s6682_s9 + $0xa8] sm:$0xff] %vm3638_vm2, %v3425_v36  ;;  %v3420_v44 = vadd.f32 %v3419_v14, %v6655_v19 }
 0x353   : > { %v5113_v26 = vpop.f32.mrf.mxu1 }
 0x354   : > { %3659 = vst.msk [vmem:[%s6682_s9 + $0xa0] sm:$0xff] %vm3638_vm2, %v3420_v44  ;;  %v3435_v11 = vadd.f32 %v5113_v26, %v6657_v22 }
 0x355   : > { %v3429_v10 = vpop.f32.mrf.mxu1 }
 0x356   : > { %3662 = vst.msk [vmem:[%s6682_s9 + $0xb8] sm:$0xff] %vm3638_vm2, %v3435_v11  ;;  %v3430_v37 = vadd.f32 %v3429_v10, %v6659_v45 }
 0x357   : > { %v5116_v28 = vpop.f32.mrf.mxu1 }
 0x358   : > { %3661 = vst.msk [vmem:[%s6682_s9 + $0xb0] sm:$0xff] %vm3638_vm2, %v3430_v37  ;;  %v3445_v19 = vadd.f32 %v5116_v28, %v6661_v50 }
 0x359   : > { %v3439_v35 = vpop.f32.mrf.mxu1 }
 0x35a   : > { %3664 = vst.msk [vmem:[%s6682_s9 + $0xc8] sm:$0xff] %vm3638_vm2, %v3445_v19  ;;  %v3440_v22 = vadd.f32 %v3439_v35, %v6663_v1 }
 0x35b   : > { %v5119_v30 = vpop.f32.mrf.mxu1 }
 0x35c   : > { %3663 = vst.msk [vmem:[%s6682_s9 + $0xc0] sm:$0xff] %vm3638_vm2, %v3440_v22  ;;  %v3455_v45 = vadd.f32 %v5119_v30, %v6665_v6 }
 0x35d   : > { %v3449_v49 = vpop.f32.mrf.mxu1 }
 0x35e   : > { %3666 = vst.msk [vmem:[%s6682_s9 + $0xd8] sm:$0xff] %vm3638_vm2, %v3455_v45  ;;  %v3450_v50 = vadd.f32 %v3449_v49, %v6667_v23  ;;  %v2972_v23 = vpop.f32.mrf.mxu0 }
 0x35f   : > { %v5122_v39 = vpop.f32.mrf.mxu1 }
 0x360   : > { %3665 = vst.msk [vmem:[%s6682_s9 + $0xd0] sm:$0xff] %vm3638_vm2, %v3450_v50  ;;  %v3465_v1 = vadd.f32 %v5122_v39, %v6669_v25 }
 0x361   : > { %v3459_v40 = vpop.f32.mrf.mxu1 }
 0x362   : > { %3668 = vst.msk [vmem:[%s6682_s9 + $0xe8] sm:$0xff] %vm3638_vm2, %v3465_v1  ;;  %v3460_v6 = vadd.f32 %v3459_v40, %v6671_v59  ;;  %v5048_v59 = vpop.f32.mrf.mxu0 }
 0x363   : > { %v5125_v60 = vpop.f32.mrf.mxu1 }
 0x364   : > { %3667 = vst.msk [vmem:[%s6682_s9 + $0xe0] sm:$0xff] %vm3638_vm2, %v3460_v6  ;;  %v3475_v2 = vadd.f32 %v5125_v60, %v6673_v57 }
 0x365   : > { %v3469_v31 = vpop.f32.mrf.mxu1 }
 0x366   : > { %3670 = vst.msk [vmem:[%s6682_s9 + $0xf8] sm:$0xff] %vm3638_vm2, %v3475_v2  ;;  %v3470_v25 = vadd.f32 %v3469_v31, %v6675_v5  ;;  %v2982_v5 = vpop.f32.mrf.mxu0 }
 0x367   : > { %v5128_v3 = vpop.f32.mrf.mxu1 }
 0x368   : > { %3669 = vst.msk [vmem:[%s6682_s9 + $0xf0] sm:$0xff] %vm3638_vm2, %v3470_v25  ;;  %v3485_v33 = vadd.f32 %v5128_v3, %v6685_v27 }
 0x369   : > { %v3479_v9 = vpop.f32.mrf.mxu1 }
 0x36a   : > { %3672 = vst.msk [vmem:[%s6682_s9 + $0x108] sm:$0xff] %vm3638_vm2, %v3485_v33  ;;  %v3480_v57 = vadd.f32 %v3479_v9, %v6693_v12  ;;  %v5051_v12 = vpop.f32.mrf.mxu0 }
 0x36b   : > { %v5131_v62 = vpop.f32.mrf.mxu1 }
 0x36c   : > { %3671 = vst.msk [vmem:[%s6682_s9 + $0x100] sm:$0xff] %vm3638_vm2, %v3480_v57  ;;  %v3495_v43 = vadd.f32 %v5131_v62, %v6701_v53 }
 0x36d   : > { %v3489_v7 = vpop.f32.mrf.mxu1 }
 0x36e   : > { %3674 = vst.msk [vmem:[%s6682_s9 + $0x118] sm:$0xff] %vm3638_vm2, %v3495_v43  ;;  %v3490_v27 = vadd.f32 %v3489_v7, %v6709_v48  ;;  %v2992_v48 = vpop.f32.mrf.mxu0 }
 0x36f   : > { %v5134_v29 = vpop.f32.mrf.mxu1 }
 0x370   : > { %3673 = vst.msk [vmem:[%s6682_s9 + $0x110] sm:$0xff] %vm3638_vm2, %v3490_v27  ;;  %v3505_v32 = vadd.f32 %v5134_v29, %v6717_v13 }
 0x371   : > { %v3499_v56 = vpop.f32.mrf.mxu1 }
 0x372   : > { %3676 = vst.msk [vmem:[%s6682_s9 + $0x128] sm:$0xff] %vm3638_vm2, %v3505_v32  ;;  %v3500_v53 = vadd.f32 %v3499_v56, %v6725_v54  ;;  %v5054_v54 = vpop.f32.mrf.mxu0 }
 0x373   : > { %v5137_v34 = vpop.f32.mrf.mxu1 }
 0x374   : > { %3675 = vst.msk [vmem:[%s6682_s9 + $0x120] sm:$0xff] %vm3638_vm2, %v3500_v53  ;;  %v3515_v52 = vadd.f32 %v5137_v34, %v6733_v55 }
 0x375   : > { %v3509_v47 = vpop.f32.mrf.mxu1 }
 0x376   : > { %3678 = vst.msk [vmem:[%s6682_s9 + $0x138] sm:$0xff] %vm3638_vm2, %v3515_v52  ;;  %v3510_v13 = vadd.f32 %v3509_v47, %v6741_v17  ;;  %v3002_v17 = vpop.f32.mrf.mxu0 }
 0x377   : > { %v5140_v58 = vpop.f32.mrf.mxu1 }
 0x378   : > { %3677 = vst.msk [vmem:[%s6682_s9 + $0x130] sm:$0xff] %vm3638_vm2, %v3510_v13  ;;  %v3525_v0 = vadd.f32 %v5140_v58, %v6749_v61 }
 0x379   : > { %v3519_v63 = vpop.f32.mrf.mxu1 }
 0x37a   : > { %3680 = vst.msk [vmem:[%s6682_s9 + $0x148] sm:$0xff] %vm3638_vm2, %v3525_v0  ;;  %v3520_v55 = vadd.f32 %v3519_v63, %v6757_v42  ;;  %v5057_v42 = vpop.f32.mrf.mxu0 }
 0x37b   : > { %v5143_v38 = vpop.f32.mrf.mxu1 }
 0x37c   : > { %3679 = vst.msk [vmem:[%s6682_s9 + $0x140] sm:$0xff] %vm3638_vm2, %v3520_v55  ;;  %v3535_v16 = vadd.f32 %v5143_v38, %v6765_v4  ;;  %v3012_v14 = vpop.f32.mrf.mxu0 }
 0x37d   : > { %v3529_v15 = vpop.f32.mrf.mxu1 }
 0x37e   : > { %3682 = vst.msk [vmem:[%s6682_s9 + $0x158] sm:$0xff] %vm3638_vm2, %v3535_v16  ;;  %v3530_v61 = vadd.f32 %v3529_v15, %v6773_v41  ;;  %v5060_v10 = vpop.f32.mrf.mxu0 }
 0x37f   : > { %v5146_v18 = vpop.f32.mrf.mxu1 }
 0x380   : > { %3681 = vst.msk [vmem:[%s6682_s9 + $0x150] sm:$0xff] %vm3638_vm2, %v3530_v61  ;;  %v3545_v8 = vadd.f32 %v5146_v18, %v6781_v46  ;;  %v3022_v35 = vpop.f32.mrf.mxu0 }
 0x381   : > { %v3539_v20 = vpop.f32.mrf.mxu1 }
 0x382   : > { %3684 = vst.msk [vmem:[%s6682_s9 + $0x168] sm:$0xff] %vm3638_vm2, %v3545_v8  ;;  %v3540_v24 = vadd.f32 %v3539_v20, %v6789_v21  ;;  %v5063_v49 = vpop.f32.mrf.mxu0 }
 0x383   : > { %v5149_v36 = vpop.f32.mrf.mxu1 }
 0x384   : > { %3683 = vst.msk [vmem:[%s6682_s9 + $0x160] sm:$0xff] %vm3638_vm2, %v3540_v24  ;;  %v3555_v4 = vadd.f32 %v5149_v36, %v5045_v51  ;;  %v3032_v40 = vpop.f32.mrf.mxu0 }
 0x385   : > { %v3549_v44 = vpop.f32.mrf.mxu1 }
 0x386   : > { %3686 = vst.msk [vmem:[%s6682_s9 + $0x178] sm:$0xff] %vm3638_vm2, %v3555_v4  ;;  %v3550_v26 = vadd.f32 %v3549_v44, %v2972_v23  ;;  %v5066_v31 = vpop.f32.mrf.mxu0 }
 0x387   : > { %v5152_v11 = vpop.f32.mrf.mxu1 }
 0x388   : > { %3685 = vst.msk [vmem:[%s6682_s9 + $0x170] sm:$0xff] %vm3638_vm2, %v3550_v26  ;;  %v3565_v41 = vadd.f32 %v5152_v11, %v5048_v59  ;;  %v3042_v9 = vpop.f32.mrf.mxu0 }
 0x389   : > { %v3559_v37 = vpop.f32.mrf.mxu1 }
 0x38a   : > { %3688 = vst.msk [vmem:[%s6682_s9 + $0x188] sm:$0xff] %vm3638_vm2, %v3565_v41  ;;  %v3560_v28 = vadd.f32 %v3559_v37, %v2982_v5  ;;  %v5069_v7 = vpop.f32.mrf.mxu0 }
 0x38b   : > { %v5155_v19 = vpop.f32.mrf.mxu1 }
 0x38c   : > { %3687 = vst.msk [vmem:[%s6682_s9 + $0x180] sm:$0xff] %vm3638_vm2, %v3560_v28  ;;  %v3575_v46 = vadd.f32 %v5155_v19, %v5051_v12  ;;  %v3052_v56 = vpop.f32.mrf.mxu0 }
 0x38d   : > { %v3569_v22 = vpop.f32.mrf.mxu1 }
 0x38e   : > { %3690 = vst.msk [vmem:[%s6682_s9 + $0x198] sm:$0xff] %vm3638_vm2, %v3575_v46  ;;  %v3570_v30 = vadd.f32 %v3569_v22, %v2992_v48 }
 0x38f   : > { %v5158_v45 = vpop.f32.mrf.mxu1 }
 0x390   : > { %3689 = vst.msk [vmem:[%s6682_s9 + $0x190] sm:$0xff] %vm3638_vm2, %v3570_v30  ;;  %v3585_v21 = vadd.f32 %v5158_v45, %v5054_v54 }
 0x391   : > { %v3579_v50 = vpop.f32.mrf.mxu1 }
 0x392   : > { %3692 = vst.msk [vmem:[%s6682_s9 + $0x1a8] sm:$0xff] %vm3638_vm2, %v3585_v21  ;;  %v3580_v39 = vadd.f32 %v3579_v50, %v3002_v17 }
 0x393   : > { %v5161_v1 = vpop.f32.mrf.mxu1 }
 0x394   : > { %3691 = vst.msk [vmem:[%s6682_s9 + $0x1a0] sm:$0xff] %vm3638_vm2, %v3580_v39  ;;  %v3595_v51 = vadd.f32 %v5161_v1, %v5057_v42 }
 0x395   : > { %v3589_v6 = vpop.f32.mrf.mxu1 }
 0x396   : > { %3694 = vst.msk [vmem:[%s6682_s9 + $0x1b8] sm:$0xff] %vm3638_vm2, %v3595_v51  ;;  %v3590_v60 = vadd.f32 %v3589_v6, %v3012_v14 }
 0x397   : > { %v5164_v2 = vpop.f32.mrf.mxu1 }
 0x398   : > { %3693 = vst.msk [vmem:[%s6682_s9 + $0x1b0] sm:$0xff] %vm3638_vm2, %v3590_v60  ;;  %v3605_v23 = vadd.f32 %v5164_v2, %v5060_v10 }
 0x399   : > { %v3599_v25 = vpop.f32.mrf.mxu1 }
 0x39a   : > { %3696 = vst.msk [vmem:[%s6682_s9 + $0x1c8] sm:$0xff] %vm3638_vm2, %v3605_v23  ;;  %v3600_v3 = vadd.f32 %v3599_v25, %v3022_v35 }
 0x39b   : > { %v5167_v33 = vpop.f32.mrf.mxu1 }
 0x39c   : > { %3695 = vst.msk [vmem:[%s6682_s9 + $0x1c0] sm:$0xff] %vm3638_vm2, %v3600_v3  ;;  %v3615_v59 = vadd.f32 %v5167_v33, %v5063_v49 }
 0x39d   : > { %v3609_v57 = vpop.f32.mrf.mxu1 }
 0x39e   : > { %3698 = vst.msk [vmem:[%s6682_s9 + $0x1d8] sm:$0xff] %vm3638_vm2, %v3615_v59  ;;  %v3610_v62 = vadd.f32 %v3609_v57, %v3032_v40 }
 0x39f   : > { %v5170_v43 = vpop.f32.mrf.mxu1 }
 0x3a0   : > { %3697 = vst.msk [vmem:[%s6682_s9 + $0x1d0] sm:$0xff] %vm3638_vm2, %v3610_v62  ;;  %v3625_v5 = vadd.f32 %v5170_v43, %v5066_v31 }
 0x3a1   : > { %v3619_v27 = vpop.f32.mrf.mxu1 }
 0x3a2   : > { %3700 = vst.msk [vmem:[%s6682_s9 + $0x1e8] sm:$0xff] %vm3638_vm2, %v3625_v5  ;;  %v3620_v29 = vadd.f32 %v3619_v27, %v3042_v9 }
 0x3a3   : > { %v5173_v32 = vpop.f32.mrf.mxu1 }
 0x3a4   : > { %3699 = vst.msk [vmem:[%s6682_s9 + $0x1e0] sm:$0xff] %vm3638_vm2, %v3620_v29  ;;  %v3635_v12 = vadd.f32 %v5173_v32, %v5069_v7 }
 0x3a5   : > { %v3629_v53 = vpop.f32.mrf.mxu1 }
 0x3a6   : > { %3702 = vst.msk [vmem:[%s6682_s9 + $0x1f8] sm:$0xff] %vm3638_vm2, %v3635_v12  ;;  %v3630_v34 = vadd.f32 %v3629_v53, %v3052_v56 }
 0x3a8   : > { %3701 = vst.msk [vmem:[%s6682_s9 + $0x1f0] sm:$0xff] %vm3638_vm2, %v3630_v34 }
 0x3a9 PF: > { %s17_s24 = sadd.s32 1, %s5188_s24  }
 0x3aa   : > { %p14_p4 = scmp.ge.s32.totalorder %s17_s24, 4  }
 0x3ac   :  { %16 = sbr.rel (!%p14_p4) target bundleno = 1 (0x1), region = 78 }

</bundles_post_ra>
